<compile_context>
chip_gen: v7x
topology: tpu7x:2x2x1
jax: 0.10.0
libtpu: 0.0.40
codegen_flags: <defaults>
</compile_context>

<pallas_src>
import jax
import jax.numpy as jnp
import numpy as np
from jax import lax
from jax.experimental import pallas as pl
from jax.experimental.pallas import tpu as pltpu

HIDDEN_SIZE = 32
NUM_LAYERS = 2
EMBEDDING_DIM = 16
VOCAB = 256
NUM_CLASSES = 4
SUBLANE = 8


# ------------------------- fused Pallas kernel -------------------------

def fused_embedding_gru_kernel(ids_ref, len_ref, emb_ref,
                               wih0_ref, whh0_ref, bih0_ref, bhh0_ref,
                               wih1_ref, whh1_ref, bih1_ref, bhh1_ref,
                               wout_ref, bout_ref,
                               out_ref,
                               gi_ref, seq_ref):
    """Whole forward pass in one kernel invocation (no grid).

    ids_ref : (T*Bp, 1) int32   flattened char ids (row = t*Bp + b)
    len_ref : (Bp, 1)   int32   sequence lengths (0 for padded batch rows)
    emb_ref : (VOCAB, E)        embedding table (VMEM resident)
    w*_ref  : GRU / Linear weights (pre-transposed for x @ W layout)
    out_ref : (NUM_LAYERS*Bp, NUM_CLASSES)
    gi_ref  : (T*Bp, 3H) VMEM scratch  -- per-layer input projections
    seq_ref : (T*Bp, H)  VMEM scratch  -- layer-0 sequence output
    """
    TB = ids_ref.shape[0]
    Bp = len_ref.shape[0]
    T = TB // Bp
    H = whh0_ref.shape[0]
    vocab = emb_ref.shape[0]

    # ---- embedding lookup for all timesteps at once (one-hot matmul, MXU) ----
    ids = ids_ref[...]                                               # (T*Bp, 1)
    onehot = (ids == lax.broadcasted_iota(jnp.int32, (TB, vocab), 1)
              ).astype(jnp.float32)                                  # (T*Bp, V)
    x0 = jnp.dot(onehot, emb_ref[...],
                 preferred_element_type=jnp.float32)                 # (T*Bp, E)

    lengths = len_ref[...]                                           # (Bp, 1)

    def gru_gates(gi, gh, h):
        # PyTorch gate order: r, z, n ; b_hh stays inside r * gh_n.
        r = jax.nn.sigmoid(gi[:, 0 * H:1 * H] + gh[:, 0 * H:1 * H])
        z = jax.nn.sigmoid(gi[:, 1 * H:2 * H] + gh[:, 1 * H:2 * H])
        n = jnp.tanh(gi[:, 2 * H:3 * H] + r * gh[:, 2 * H:3 * H])
        return (1.0 - z) * n + z * h

    # ---------------- layer 0 ----------------
    # Non-recurrent input projection for all T steps in one MXU call.
    gi_ref[...] = (jnp.dot(x0, wih0_ref[...],
                           preferred_element_type=jnp.float32) + bih0_ref[...])

    def step0(t, h):
        off = pl.multiple_of(t * Bp, Bp)
        gi = gi_ref[pl.ds(off, Bp), :]                               # (Bp, 3H)
        gh = (jnp.dot(h, whh0_ref[...],
                      preferred_element_type=jnp.float32) + bhh0_ref[...])
        h_new = gru_gates(gi, gh, h)
        h_new = jnp.where(t < lengths, h_new, h)    # freeze past sequence end
        seq_ref[pl.ds(off, Bp), :] = h_new          # layer-0 output stays in VMEM
        return h_new

    h0 = lax.fori_loop(0, T, step0, jnp.zeros((Bp, H), jnp.float32),
                       unroll=True)

    # ---------------- layer 1 ----------------
    gi_ref[...] = (jnp.dot(seq_ref[...], wih1_ref[...],
                           preferred_element_type=jnp.float32) + bih1_ref[...])

    def step1(t, h):
        off = pl.multiple_of(t * Bp, Bp)
        gi = gi_ref[pl.ds(off, Bp), :]
        gh = (jnp.dot(h, whh1_ref[...],
                      preferred_element_type=jnp.float32) + bhh1_ref[...])
        h_new = gru_gates(gi, gh, h)
        return jnp.where(t < lengths, h_new, h)

    h1 = lax.fori_loop(0, T, step1, jnp.zeros((Bp, H), jnp.float32),
                       unroll=True)

    # ---------------- output layer on hn ----------------
    hn = jnp.concatenate([h0, h1], axis=0)                           # (2*Bp, H)
    out_ref[...] = (jnp.dot(hn, wout_ref[...],
                            preferred_element_type=jnp.float32) + bout_ref[...])


# ------------------------- wrapper -------------------------

@jax.jit
def embedding_gru_forward(params, padded, lengths):
    T, B = padded.shape
    Bp = ((B + SUBLANE - 1) // SUBLANE) * SUBLANE     # pad batch to sublane multiple

    ids = jnp.zeros((T, Bp), jnp.int32).at[:, :B].set(padded.astype(jnp.int32))
    lens = jnp.zeros((Bp,), jnp.int32).at[:B].set(lengths.astype(jnp.int32))
    ids2 = ids.reshape(T * Bp, 1)
    lens2 = lens.reshape(Bp, 1)

    preds = pl.pallas_call(
        fused_embedding_gru_kernel,
        out_shape=jax.ShapeDtypeStruct((NUM_LAYERS * Bp, NUM_CLASSES),
                                       jnp.float32),
        scratch_shapes=[
            pltpu.VMEM((T * Bp, 3 * HIDDEN_SIZE), jnp.float32),  # gi scratch
            pltpu.VMEM((T * Bp, HIDDEN_SIZE), jnp.float32),      # layer-0 seq out
        ],
    )(ids2, lens2, params["emb"],
      params["w_ih_t_0"], params["w_hh_t_0"], params["b_ih_0"], params["b_hh_0"],
      params["w_ih_t_1"], params["w_hh_t_1"], params["b_ih_1"], params["b_hh_1"],
      params["w_out_t"], params["b_out"])

    return preds.reshape(NUM_LAYERS, Bp, NUM_CLASSES)[:, :B, :]


# ------------------------- parameters -------------------------

def init_params(key):
    ks = jax.random.split(key, 3 + 4 * NUM_LAYERS)
    params = {}
    params["emb"] = 0.1 * jax.random.normal(ks[0], (VOCAB, EMBEDDING_DIM),
                                            jnp.float32)
    bound = 1.0 / np.sqrt(HIDDEN_SIZE)
    for l in range(NUM_LAYERS):
        d_in = EMBEDDING_DIM if l == 0 else HIDDEN_SIZE
        k = ks[3 + 4 * l: 3 + 4 * (l + 1)]
        # stored already transposed for row-major x @ W layout
        params[f"w_ih_t_{l}"] = jax.random.uniform(
            k[0], (d_in, 3 * HIDDEN_SIZE), jnp.float32, -bound, bound)
        params[f"w_hh_t_{l}"] = jax.random.uniform(
            k[1], (HIDDEN_SIZE, 3 * HIDDEN_SIZE), jnp.float32, -bound, bound)
        params[f"b_ih_{l}"] = jax.random.uniform(
            k[2], (1, 3 * HIDDEN_SIZE), jnp.float32, -bound, bound)
        params[f"b_hh_{l}"] = jax.random.uniform(
            k[3], (1, 3 * HIDDEN_SIZE), jnp.float32, -bound, bound)
    params["w_out_t"] = jax.random.uniform(
        ks[1], (HIDDEN_SIZE, NUM_CLASSES), jnp.float32, -bound, bound)
    params["b_out"] = jax.random.uniform(
        ks[2], (1, NUM_CLASSES), jnp.float32, -bound, bound)
    return params


# ------------------------- pure-JAX reference -------------------------

def ref_forward(params, padded, lengths):
    T, B = padded.shape
    embeds = jnp.take(params["emb"], padded, axis=0)
    mask = (jnp.arange(T)[:, None] < lengths[None, :]).astype(jnp.float32)
    mask = mask[..., None]
    x = embeds
    hns = []
    for l in range(NUM_LAYERS):
        w_ih_t = params[f"w_ih_t_{l}"]
        w_hh_t = params[f"w_hh_t_{l}"]
        b_ih = params[f"b_ih_{l}"]
        b_hh = params[f"b_hh_{l}"]

        def step(h, inp):
            xt, mt = inp
            gi = xt @ w_ih_t + b_ih
            gh = h @ w_hh_t + b_hh
            H = HIDDEN_SIZE
            r = jax.nn.sigmoid(gi[:, :H] + gh[:, :H])
            z = jax.nn.sigmoid(gi[:, H:2 * H] + gh[:, H:2 * H])
            n = jnp.tanh(gi[:, 2 * H:] + r * gh[:, 2 * H:])
            h_new = (1.0 - z) * n + z * h
            h_new = mt * h_new + (1.0 - mt) * h
            return h_new, h_new

        h0 = jnp.zeros((B, HIDDEN_SIZE), jnp.float32)
        h_last, outs = lax.scan(step, h0, (x, mask))
        hns.append(h_last)
        x = outs
    hn = jnp.stack(hns, axis=0)
    return hn @ params["w_out_t"] + params["b_out"]


# ------------------------- main -------------------------

if __name__ == "__main__":
    key = jax.random.PRNGKey(0)
    kp, kd = jax.random.split(key)
    params = init_params(kp)

    T, B = 8, 4
    padded = jax.random.randint(kd, (T, B), 0, VOCAB, dtype=jnp.int32)
    lengths = jnp.array([8, 7, 5, 3], dtype=jnp.int32)  # sorted desc, max == T

    preds = embedding_gru_forward(params, padded, lengths)
    preds = jax.block_until_ready(preds)

    ref = jax.block_until_ready(ref_forward(params, padded, lengths))
    assert preds.shape == (NUM_LAYERS, B, NUM_CLASSES)
    np.testing.assert_allclose(np.asarray(preds), np.asarray(ref),
                               rtol=1e-5, atol=1e-5)
    print("KERNEL_OK")
</pallas_src>

<mosaic_0001>
module attributes {stable_mosaic.version = 11 : i64} {
  func.func @fused_embedding_gru_kernel(%arg0: memref<64x1xi32, #tpu.memory_space<vmem>>, %arg1: memref<8x1xi32, #tpu.memory_space<vmem>>, %arg2: memref<256x16xf32, #tpu.memory_space<vmem>>, %arg3: memref<16x96xf32, #tpu.memory_space<vmem>>, %arg4: memref<32x96xf32, #tpu.memory_space<vmem>>, %arg5: memref<1x96xf32, #tpu.memory_space<vmem>>, %arg6: memref<1x96xf32, #tpu.memory_space<vmem>>, %arg7: memref<32x96xf32, #tpu.memory_space<vmem>>, %arg8: memref<32x96xf32, #tpu.memory_space<vmem>>, %arg9: memref<1x96xf32, #tpu.memory_space<vmem>>, %arg10: memref<1x96xf32, #tpu.memory_space<vmem>>, %arg11: memref<32x4xf32, #tpu.memory_space<vmem>>, %arg12: memref<1x4xf32, #tpu.memory_space<vmem>>, %arg13: memref<16x4xf32, #tpu.memory_space<vmem>>, %arg14: memref<64x96xf32, #tpu.memory_space<vmem>>, %arg15: memref<64x32xf32, #tpu.memory_space<vmem>>) attributes {dimension_semantics = [], scalar_prefetch = 0 : i64, scratch_operands = 2 : i64, tpu.core_type = #tpu.core_type<tc>} {
    %c0 = arith.constant 0 : index
    %c0_0 = arith.constant 0 : index
    %0 = vector.load %arg0[%c0, %c0_0] : memref<64x1xi32, #tpu.memory_space<vmem>>, vector<64x1xi32>
    %1 = tpu.iota {dimensions = array<i32: 1>} : vector<64x256xi32>
    %2 = vector.broadcast %0 : vector<64x1xi32> to vector<64x256xi32>
    %3 = arith.cmpi eq, %2, %1 : vector<64x256xi32>
    %4 = arith.extui %3 : vector<64x256xi1> to vector<64x256xi32>
    %5 = arith.sitofp %4 : vector<64x256xi32> to vector<64x256xf32>
    %c0_1 = arith.constant 0 : index
    %c0_2 = arith.constant 0 : index
    %6 = vector.load %arg2[%c0_1, %c0_2] : memref<256x16xf32, #tpu.memory_space<vmem>>, vector<256x16xf32>
    %cst = arith.constant dense<0.000000e+00> : vector<64x16xf32>
    %7 = tpu.matmul %5, %6, %cst {dimension_numbers = #tpu.dot_dimension_numbers<[1], [0], [0], [1], [0, 0, 1, 1], [], []>} : vector<64x256xf32>, vector<256x16xf32>, vector<64x16xf32> -> vector<64x16xf32>
    %c0_3 = arith.constant 0 : index
    %c0_4 = arith.constant 0 : index
    %8 = vector.load %arg1[%c0_3, %c0_4] : memref<8x1xi32, #tpu.memory_space<vmem>>, vector<8x1xi32>
    %c0_5 = arith.constant 0 : index
    %c0_6 = arith.constant 0 : index
    %9 = vector.load %arg3[%c0_5, %c0_6] : memref<16x96xf32, #tpu.memory_space<vmem>>, vector<16x96xf32>
    %cst_7 = arith.constant dense<0.000000e+00> : vector<64x96xf32>
    %10 = tpu.matmul %7, %9, %cst_7 {dimension_numbers = #tpu.dot_dimension_numbers<[1], [0], [0], [1], [0, 0, 1, 1], [], []>} : vector<64x16xf32>, vector<16x96xf32>, vector<64x96xf32> -> vector<64x96xf32>
    %c0_8 = arith.constant 0 : index
    %c0_9 = arith.constant 0 : index
    %11 = vector.load %arg5[%c0_8, %c0_9] : memref<1x96xf32, #tpu.memory_space<vmem>>, vector<1x96xf32>
    %12 = vector.broadcast %11 : vector<1x96xf32> to vector<64x96xf32>
    %13 = arith.addf %10, %12 : vector<64x96xf32>
    %c0_10 = arith.constant 0 : index
    %c0_11 = arith.constant 0 : index
    %14 = vector.load %arg14[%c0_10, %c0_11] : memref<64x96xf32, #tpu.memory_space<vmem>>, vector<64x96xf32>
    tpu.vector_store %arg14[%c0_10, %c0_11], %13 {strides = array<i32>} : memref<64x96xf32, #tpu.memory_space<vmem>>, vector<64x96xf32>,
    %cst_12 = arith.constant 0.000000e+00 : f32
    %15 = vector.broadcast %cst_12 : f32 to vector<8x32xf32>
    %c0_i32 = arith.constant 0 : i32
    %c8_i32 = arith.constant 8 : i32
    %16 = arith.muli %c0_i32, %c8_i32 : i32
    %17 = tpu.assume_multiple %16, 8 : i32
    %18 = arith.index_cast %17 : i32 to index
    %c0_13 = arith.constant 0 : index
    %19 = vector.load %arg14[%18, %c0_13] : memref<64x96xf32, #tpu.memory_space<vmem>>, vector<8x96xf32>
    %c0_14 = arith.constant 0 : index
    %c0_15 = arith.constant 0 : index
    %20 = vector.load %arg4[%c0_14, %c0_15] : memref<32x96xf32, #tpu.memory_space<vmem>>, vector<32x96xf32>
    %cst_16 = arith.constant dense<0.000000e+00> : vector<8x96xf32>
    %21 = tpu.matmul %15, %20, %cst_16 {dimension_numbers = #tpu.dot_dimension_numbers<[1], [0], [0], [1], [0, 0, 1, 1], [], []>} : vector<8x32xf32>, vector<32x96xf32>, vector<8x96xf32> -> vector<8x96xf32>
    %c0_17 = arith.constant 0 : index
    %c0_18 = arith.constant 0 : index
    %22 = vector.load %arg6[%c0_17, %c0_18] : memref<1x96xf32, #tpu.memory_space<vmem>>, vector<1x96xf32>
    %23 = vector.broadcast %22 : vector<1x96xf32> to vector<8x96xf32>
    %24 = arith.addf %21, %23 : vector<8x96xf32>
    %25 = vector.extract_strided_slice %19 {offsets = [0, 0], sizes = [8, 32], strides = [1, 1]} : vector<8x96xf32> to vector<8x32xf32>
    %26 = vector.extract_strided_slice %24 {offsets = [0, 0], sizes = [8, 32], strides = [1, 1]} : vector<8x96xf32> to vector<8x32xf32>
    %27 = arith.addf %25, %26 : vector<8x32xf32>
    %28 = arith.negf %27 : vector<8x32xf32>
    %29 = math.exp %28 : vector<8x32xf32>
    %cst_19 = arith.constant 1.000000e+00 : f32
    %30 = vector.broadcast %cst_19 : f32 to vector<8x32xf32>
    %31 = arith.addf %30, %29 : vector<8x32xf32>
    %32 = arith.divf %30, %31 : vector<8x32xf32>
    %33 = vector.extract_strided_slice %19 {offsets = [0, 32], sizes = [8, 32], strides = [1, 1]} : vector<8x96xf32> to vector<8x32xf32>
    %34 = vector.extract_strided_slice %24 {offsets = [0, 32], sizes = [8, 32], strides = [1, 1]} : vector<8x96xf32> to vector<8x32xf32>
    %35 = arith.addf %33, %34 : vector<8x32xf32>
    %36 = arith.negf %35 : vector<8x32xf32>
    %37 = math.exp %36 : vector<8x32xf32>
    %cst_20 = arith.constant 1.000000e+00 : f32
    %38 = vector.broadcast %cst_20 : f32 to vector<8x32xf32>
    %39 = arith.addf %38, %37 : vector<8x32xf32>
    %40 = arith.divf %38, %39 : vector<8x32xf32>
    %41 = vector.extract_strided_slice %19 {offsets = [0, 64], sizes = [8, 32], strides = [1, 1]} : vector<8x96xf32> to vector<8x32xf32>
    %42 = vector.extract_strided_slice %24 {offsets = [0, 64], sizes = [8, 32], strides = [1, 1]} : vector<8x96xf32> to vector<8x32xf32>
    %43 = arith.mulf %32, %42 : vector<8x32xf32>
    %44 = arith.addf %41, %43 : vector<8x32xf32>
    %45 = math.tanh %44 : vector<8x32xf32>
    %cst_21 = arith.constant 1.000000e+00 : f32
    %46 = vector.broadcast %cst_21 : f32 to vector<8x32xf32>
    %47 = arith.subf %46, %40 : vector<8x32xf32>
    %48 = arith.mulf %47, %45 : vector<8x32xf32>
    %49 = arith.mulf %40, %15 : vector<8x32xf32>
    %50 = arith.addf %48, %49 : vector<8x32xf32>
    %51 = vector.broadcast %c0_i32 : i32 to vector<8x1xi32>
    %52 = arith.cmpi slt, %51, %8 : vector<8x1xi32>
    %53 = vector.shape_cast %52 : vector<8x1xi1> to vector<8x1xi1>
    %54 = vector.broadcast %53 : vector<8x1xi1> to vector<8x32xi1>
    %55 = arith.select %54, %50, %15 : vector<8x32xi1>, vector<8x32xf32>
    %56 = arith.index_cast %17 : i32 to index
    %c0_22 = arith.constant 0 : index
    %57 = vector.load %arg15[%56, %c0_22] : memref<64x32xf32, #tpu.memory_space<vmem>>, vector<8x32xf32>
    tpu.vector_store %arg15[%56, %c0_22], %55 {strides = array<i32>} : memref<64x32xf32, #tpu.memory_space<vmem>>, vector<8x32xf32>,
    %c1_i32 = arith.constant 1 : i32
    %c8_i32_23 = arith.constant 8 : i32
    %58 = arith.muli %c1_i32, %c8_i32_23 : i32
    %59 = tpu.assume_multiple %58, 8 : i32
    %60 = arith.index_cast %59 : i32 to index
    %c0_24 = arith.constant 0 : index
    %61 = vector.load %arg14[%60, %c0_24] : memref<64x96xf32, #tpu.memory_space<vmem>>, vector<8x96xf32>
    %c0_25 = arith.constant 0 : index
    %c0_26 = arith.constant 0 : index
    %62 = vector.load %arg4[%c0_25, %c0_26] : memref<32x96xf32, #tpu.memory_space<vmem>>, vector<32x96xf32>
    %cst_27 = arith.constant dense<0.000000e+00> : vector<8x96xf32>
    %63 = tpu.matmul %55, %62, %cst_27 {dimension_numbers = #tpu.dot_dimension_numbers<[1], [0], [0], [1], [0, 0, 1, 1], [], []>} : vector<8x32xf32>, vector<32x96xf32>, vector<8x96xf32> -> vector<8x96xf32>
    %c0_28 = arith.constant 0 : index
    %c0_29 = arith.constant 0 : index
    %64 = vector.load %arg6[%c0_28, %c0_29] : memref<1x96xf32, #tpu.memory_space<vmem>>, vector<1x96xf32>
    %65 = vector.broadcast %64 : vector<1x96xf32> to vector<8x96xf32>
    %66 = arith.addf %63, %65 : vector<8x96xf32>
    %67 = vector.extract_strided_slice %61 {offsets = [0, 0], sizes = [8, 32], strides = [1, 1]} : vector<8x96xf32> to vector<8x32xf32>
    %68 = vector.extract_strided_slice %66 {offsets = [0, 0], sizes = [8, 32], strides = [1, 1]} : vector<8x96xf32> to vector<8x32xf32>
    %69 = arith.addf %67, %68 : vector<8x32xf32>
    %70 = arith.negf %69 : vector<8x32xf32>
    %71 = math.exp %70 : vector<8x32xf32>
    %cst_30 = arith.constant 1.000000e+00 : f32
    %72 = vector.broadcast %cst_30 : f32 to vector<8x32xf32>
    %73 = arith.addf %72, %71 : vector<8x32xf32>
    %74 = arith.divf %72, %73 : vector<8x32xf32>
    %75 = vector.extract_strided_slice %61 {offsets = [0, 32], sizes = [8, 32], strides = [1, 1]} : vector<8x96xf32> to vector<8x32xf32>
    %76 = vector.extract_strided_slice %66 {offsets = [0, 32], sizes = [8, 32], strides = [1, 1]} : vector<8x96xf32> to vector<8x32xf32>
    %77 = arith.addf %75, %76 : vector<8x32xf32>
    %78 = arith.negf %77 : vector<8x32xf32>
    %79 = math.exp %78 : vector<8x32xf32>
    %cst_31 = arith.constant 1.000000e+00 : f32
    %80 = vector.broadcast %cst_31 : f32 to vector<8x32xf32>
    %81 = arith.addf %80, %79 : vector<8x32xf32>
    %82 = arith.divf %80, %81 : vector<8x32xf32>
    %83 = vector.extract_strided_slice %61 {offsets = [0, 64], sizes = [8, 32], strides = [1, 1]} : vector<8x96xf32> to vector<8x32xf32>
    %84 = vector.extract_strided_slice %66 {offsets = [0, 64], sizes = [8, 32], strides = [1, 1]} : vector<8x96xf32> to vector<8x32xf32>
    %85 = arith.mulf %74, %84 : vector<8x32xf32>
    %86 = arith.addf %83, %85 : vector<8x32xf32>
    %87 = math.tanh %86 : vector<8x32xf32>
    %cst_32 = arith.constant 1.000000e+00 : f32
    %88 = vector.broadcast %cst_32 : f32 to vector<8x32xf32>
    %89 = arith.subf %88, %82 : vector<8x32xf32>
    %90 = arith.mulf %89, %87 : vector<8x32xf32>
    %91 = arith.mulf %82, %55 : vector<8x32xf32>
    %92 = arith.addf %90, %91 : vector<8x32xf32>
    %93 = vector.broadcast %c1_i32 : i32 to vector<8x1xi32>
    %94 = arith.cmpi slt, %93, %8 : vector<8x1xi32>
    %95 = vector.shape_cast %94 : vector<8x1xi1> to vector<8x1xi1>
    %96 = vector.broadcast %95 : vector<8x1xi1> to vector<8x32xi1>
    %97 = arith.select %96, %92, %55 : vector<8x32xi1>, vector<8x32xf32>
    %98 = arith.index_cast %59 : i32 to index
    %c0_33 = arith.constant 0 : index
    %99 = vector.load %arg15[%98, %c0_33] : memref<64x32xf32, #tpu.memory_space<vmem>>, vector<8x32xf32>
    tpu.vector_store %arg15[%98, %c0_33], %97 {strides = array<i32>} : memref<64x32xf32, #tpu.memory_space<vmem>>, vector<8x32xf32>,
    %c2_i32 = arith.constant 2 : i32
    %c8_i32_34 = arith.constant 8 : i32
    %100 = arith.muli %c2_i32, %c8_i32_34 : i32
    %101 = tpu.assume_multiple %100, 8 : i32
    %102 = arith.index_cast %101 : i32 to index
    %c0_35 = arith.constant 0 : index
    %103 = vector.load %arg14[%102, %c0_35] : memref<64x96xf32, #tpu.memory_space<vmem>>, vector<8x96xf32>
    %c0_36 = arith.constant 0 : index
    %c0_37 = arith.constant 0 : index
    %104 = vector.load %arg4[%c0_36, %c0_37] : memref<32x96xf32, #tpu.memory_space<vmem>>, vector<32x96xf32>
    %cst_38 = arith.constant dense<0.000000e+00> : vector<8x96xf32>
    %105 = tpu.matmul %97, %104, %cst_38 {dimension_numbers = #tpu.dot_dimension_numbers<[1], [0], [0], [1], [0, 0, 1, 1], [], []>} : vector<8x32xf32>, vector<32x96xf32>, vector<8x96xf32> -> vector<8x96xf32>
    %c0_39 = arith.constant 0 : index
    %c0_40 = arith.constant 0 : index
    %106 = vector.load %arg6[%c0_39, %c0_40] : memref<1x96xf32, #tpu.memory_space<vmem>>, vector<1x96xf32>
    %107 = vector.broadcast %106 : vector<1x96xf32> to vector<8x96xf32>
    %108 = arith.addf %105, %107 : vector<8x96xf32>
    %109 = vector.extract_strided_slice %103 {offsets = [0, 0], sizes = [8, 32], strides = [1, 1]} : vector<8x96xf32> to vector<8x32xf32>
    %110 = vector.extract_strided_slice %108 {offsets = [0, 0], sizes = [8, 32], strides = [1, 1]} : vector<8x96xf32> to vector<8x32xf32>
    %111 = arith.addf %109, %110 : vector<8x32xf32>
    %112 = arith.negf %111 : vector<8x32xf32>
    %113 = math.exp %112 : vector<8x32xf32>
    %cst_41 = arith.constant 1.000000e+00 : f32
    %114 = vector.broadcast %cst_41 : f32 to vector<8x32xf32>
    %115 = arith.addf %114, %113 : vector<8x32xf32>
    %116 = arith.divf %114, %115 : vector<8x32xf32>
    %117 = vector.extract_strided_slice %103 {offsets = [0, 32], sizes = [8, 32], strides = [1, 1]} : vector<8x96xf32> to vector<8x32xf32>
    %118 = vector.extract_strided_slice %108 {offsets = [0, 32], sizes = [8, 32], strides = [1, 1]} : vector<8x96xf32> to vector<8x32xf32>
    %119 = arith.addf %117, %118 : vector<8x32xf32>
    %120 = arith.negf %119 : vector<8x32xf32>
    %121 = math.exp %120 : vector<8x32xf32>
    %cst_42 = arith.constant 1.000000e+00 : f32
    %122 = vector.broadcast %cst_42 : f32 to vector<8x32xf32>
    %123 = arith.addf %122, %121 : vector<8x32xf32>
    %124 = arith.divf %122, %123 : vector<8x32xf32>
    %125 = vector.extract_strided_slice %103 {offsets = [0, 64], sizes = [8, 32], strides = [1, 1]} : vector<8x96xf32> to vector<8x32xf32>
    %126 = vector.extract_strided_slice %108 {offsets = [0, 64], sizes = [8, 32], strides = [1, 1]} : vector<8x96xf32> to vector<8x32xf32>
    %127 = arith.mulf %116, %126 : vector<8x32xf32>
    %128 = arith.addf %125, %127 : vector<8x32xf32>
    %129 = math.tanh %128 : vector<8x32xf32>
    %cst_43 = arith.constant 1.000000e+00 : f32
    %130 = vector.broadcast %cst_43 : f32 to vector<8x32xf32>
    %131 = arith.subf %130, %124 : vector<8x32xf32>
    %132 = arith.mulf %131, %129 : vector<8x32xf32>
    %133 = arith.mulf %124, %97 : vector<8x32xf32>
    %134 = arith.addf %132, %133 : vector<8x32xf32>
    %135 = vector.broadcast %c2_i32 : i32 to vector<8x1xi32>
    %136 = arith.cmpi slt, %135, %8 : vector<8x1xi32>
    %137 = vector.shape_cast %136 : vector<8x1xi1> to vector<8x1xi1>
    %138 = vector.broadcast %137 : vector<8x1xi1> to vector<8x32xi1>
    %139 = arith.select %138, %134, %97 : vector<8x32xi1>, vector<8x32xf32>
    %140 = arith.index_cast %101 : i32 to index
    %c0_44 = arith.constant 0 : index
    %141 = vector.load %arg15[%140, %c0_44] : memref<64x32xf32, #tpu.memory_space<vmem>>, vector<8x32xf32>
    tpu.vector_store %arg15[%140, %c0_44], %139 {strides = array<i32>} : memref<64x32xf32, #tpu.memory_space<vmem>>, vector<8x32xf32>,
    %c3_i32 = arith.constant 3 : i32
    %c8_i32_45 = arith.constant 8 : i32
    %142 = arith.muli %c3_i32, %c8_i32_45 : i32
    %143 = tpu.assume_multiple %142, 8 : i32
    %144 = arith.index_cast %143 : i32 to index
    %c0_46 = arith.constant 0 : index
    %145 = vector.load %arg14[%144, %c0_46] : memref<64x96xf32, #tpu.memory_space<vmem>>, vector<8x96xf32>
    %c0_47 = arith.constant 0 : index
    %c0_48 = arith.constant 0 : index
    %146 = vector.load %arg4[%c0_47, %c0_48] : memref<32x96xf32, #tpu.memory_space<vmem>>, vector<32x96xf32>
    %cst_49 = arith.constant dense<0.000000e+00> : vector<8x96xf32>
    %147 = tpu.matmul %139, %146, %cst_49 {dimension_numbers = #tpu.dot_dimension_numbers<[1], [0], [0], [1], [0, 0, 1, 1], [], []>} : vector<8x32xf32>, vector<32x96xf32>, vector<8x96xf32> -> vector<8x96xf32>
    %c0_50 = arith.constant 0 : index
    %c0_51 = arith.constant 0 : index
    %148 = vector.load %arg6[%c0_50, %c0_51] : memref<1x96xf32, #tpu.memory_space<vmem>>, vector<1x96xf32>
    %149 = vector.broadcast %148 : vector<1x96xf32> to vector<8x96xf32>
    %150 = arith.addf %147, %149 : vector<8x96xf32>
    %151 = vector.extract_strided_slice %145 {offsets = [0, 0], sizes = [8, 32], strides = [1, 1]} : vector<8x96xf32> to vector<8x32xf32>
    %152 = vector.extract_strided_slice %150 {offsets = [0, 0], sizes = [8, 32], strides = [1, 1]} : vector<8x96xf32> to vector<8x32xf32>
    %153 = arith.addf %151, %152 : vector<8x32xf32>
    %154 = arith.negf %153 : vector<8x32xf32>
    %155 = math.exp %154 : vector<8x32xf32>
    %cst_52 = arith.constant 1.000000e+00 : f32
    %156 = vector.broadcast %cst_52 : f32 to vector<8x32xf32>
    %157 = arith.addf %156, %155 : vector<8x32xf32>
    %158 = arith.divf %156, %157 : vector<8x32xf32>
    %159 = vector.extract_strided_slice %145 {offsets = [0, 32], sizes = [8, 32], strides = [1, 1]} : vector<8x96xf32> to vector<8x32xf32>
    %160 = vector.extract_strided_slice %150 {offsets = [0, 32], sizes = [8, 32], strides = [1, 1]} : vector<8x96xf32> to vector<8x32xf32>
    %161 = arith.addf %159, %160 : vector<8x32xf32>
    %162 = arith.negf %161 : vector<8x32xf32>
    %163 = math.exp %162 : vector<8x32xf32>
    %cst_53 = arith.constant 1.000000e+00 : f32
    %164 = vector.broadcast %cst_53 : f32 to vector<8x32xf32>
    %165 = arith.addf %164, %163 : vector<8x32xf32>
    %166 = arith.divf %164, %165 : vector<8x32xf32>
    %167 = vector.extract_strided_slice %145 {offsets = [0, 64], sizes = [8, 32], strides = [1, 1]} : vector<8x96xf32> to vector<8x32xf32>
    %168 = vector.extract_strided_slice %150 {offsets = [0, 64], sizes = [8, 32], strides = [1, 1]} : vector<8x96xf32> to vector<8x32xf32>
    %169 = arith.mulf %158, %168 : vector<8x32xf32>
    %170 = arith.addf %167, %169 : vector<8x32xf32>
    %171 = math.tanh %170 : vector<8x32xf32>
    %cst_54 = arith.constant 1.000000e+00 : f32
    %172 = vector.broadcast %cst_54 : f32 to vector<8x32xf32>
    %173 = arith.subf %172, %166 : vector<8x32xf32>
    %174 = arith.mulf %173, %171 : vector<8x32xf32>
    %175 = arith.mulf %166, %139 : vector<8x32xf32>
    %176 = arith.addf %174, %175 : vector<8x32xf32>
    %177 = vector.broadcast %c3_i32 : i32 to vector<8x1xi32>
    %178 = arith.cmpi slt, %177, %8 : vector<8x1xi32>
    %179 = vector.shape_cast %178 : vector<8x1xi1> to vector<8x1xi1>
    %180 = vector.broadcast %179 : vector<8x1xi1> to vector<8x32xi1>
    %181 = arith.select %180, %176, %139 : vector<8x32xi1>, vector<8x32xf32>
    %182 = arith.index_cast %143 : i32 to index
    %c0_55 = arith.constant 0 : index
    %183 = vector.load %arg15[%182, %c0_55] : memref<64x32xf32, #tpu.memory_space<vmem>>, vector<8x32xf32>
    tpu.vector_store %arg15[%182, %c0_55], %181 {strides = array<i32>} : memref<64x32xf32, #tpu.memory_space<vmem>>, vector<8x32xf32>,
    %c4_i32 = arith.constant 4 : i32
    %c8_i32_56 = arith.constant 8 : i32
    %184 = arith.muli %c4_i32, %c8_i32_56 : i32
    %185 = tpu.assume_multiple %184, 8 : i32
    %186 = arith.index_cast %185 : i32 to index
    %c0_57 = arith.constant 0 : index
    %187 = vector.load %arg14[%186, %c0_57] : memref<64x96xf32, #tpu.memory_space<vmem>>, vector<8x96xf32>
    %c0_58 = arith.constant 0 : index
    %c0_59 = arith.constant 0 : index
    %188 = vector.load %arg4[%c0_58, %c0_59] : memref<32x96xf32, #tpu.memory_space<vmem>>, vector<32x96xf32>
    %cst_60 = arith.constant dense<0.000000e+00> : vector<8x96xf32>
    %189 = tpu.matmul %181, %188, %cst_60 {dimension_numbers = #tpu.dot_dimension_numbers<[1], [0], [0], [1], [0, 0, 1, 1], [], []>} : vector<8x32xf32>, vector<32x96xf32>, vector<8x96xf32> -> vector<8x96xf32>
    %c0_61 = arith.constant 0 : index
    %c0_62 = arith.constant 0 : index
    %190 = vector.load %arg6[%c0_61, %c0_62] : memref<1x96xf32, #tpu.memory_space<vmem>>, vector<1x96xf32>
    %191 = vector.broadcast %190 : vector<1x96xf32> to vector<8x96xf32>
    %192 = arith.addf %189, %191 : vector<8x96xf32>
    %193 = vector.extract_strided_slice %187 {offsets = [0, 0], sizes = [8, 32], strides = [1, 1]} : vector<8x96xf32> to vector<8x32xf32>
    %194 = vector.extract_strided_slice %192 {offsets = [0, 0], sizes = [8, 32], strides = [1, 1]} : vector<8x96xf32> to vector<8x32xf32>
    %195 = arith.addf %193, %194 : vector<8x32xf32>
    %196 = arith.negf %195 : vector<8x32xf32>
    %197 = math.exp %196 : vector<8x32xf32>
    %cst_63 = arith.constant 1.000000e+00 : f32
    %198 = vector.broadcast %cst_63 : f32 to vector<8x32xf32>
    %199 = arith.addf %198, %197 : vector<8x32xf32>
    %200 = arith.divf %198, %199 : vector<8x32xf32>
    %201 = vector.extract_strided_slice %187 {offsets = [0, 32], sizes = [8, 32], strides = [1, 1]} : vector<8x96xf32> to vector<8x32xf32>
    %202 = vector.extract_strided_slice %192 {offsets = [0, 32], sizes = [8, 32], strides = [1, 1]} : vector<8x96xf32> to vector<8x32xf32>
    %203 = arith.addf %201, %202 : vector<8x32xf32>
    %204 = arith.negf %203 : vector<8x32xf32>
    %205 = math.exp %204 : vector<8x32xf32>
    %cst_64 = arith.constant 1.000000e+00 : f32
    %206 = vector.broadcast %cst_64 : f32 to vector<8x32xf32>
    %207 = arith.addf %206, %205 : vector<8x32xf32>
    %208 = arith.divf %206, %207 : vector<8x32xf32>
    %209 = vector.extract_strided_slice %187 {offsets = [0, 64], sizes = [8, 32], strides = [1, 1]} : vector<8x96xf32> to vector<8x32xf32>
    %210 = vector.extract_strided_slice %192 {offsets = [0, 64], sizes = [8, 32], strides = [1, 1]} : vector<8x96xf32> to vector<8x32xf32>
    %211 = arith.mulf %200, %210 : vector<8x32xf32>
    %212 = arith.addf %209, %211 : vector<8x32xf32>
    %213 = math.tanh %212 : vector<8x32xf32>
    %cst_65 = arith.constant 1.000000e+00 : f32
    %214 = vector.broadcast %cst_65 : f32 to vector<8x32xf32>
    %215 = arith.subf %214, %208 : vector<8x32xf32>
    %216 = arith.mulf %215, %213 : vector<8x32xf32>
    %217 = arith.mulf %208, %181 : vector<8x32xf32>
    %218 = arith.addf %216, %217 : vector<8x32xf32>
    %219 = vector.broadcast %c4_i32 : i32 to vector<8x1xi32>
    %220 = arith.cmpi slt, %219, %8 : vector<8x1xi32>
    %221 = vector.shape_cast %220 : vector<8x1xi1> to vector<8x1xi1>
    %222 = vector.broadcast %221 : vector<8x1xi1> to vector<8x32xi1>
    %223 = arith.select %222, %218, %181 : vector<8x32xi1>, vector<8x32xf32>
    %224 = arith.index_cast %185 : i32 to index
    %c0_66 = arith.constant 0 : index
    %225 = vector.load %arg15[%224, %c0_66] : memref<64x32xf32, #tpu.memory_space<vmem>>, vector<8x32xf32>
    tpu.vector_store %arg15[%224, %c0_66], %223 {strides = array<i32>} : memref<64x32xf32, #tpu.memory_space<vmem>>, vector<8x32xf32>,
    %c5_i32 = arith.constant 5 : i32
    %c8_i32_67 = arith.constant 8 : i32
    %226 = arith.muli %c5_i32, %c8_i32_67 : i32
    %227 = tpu.assume_multiple %226, 8 : i32
    %228 = arith.index_cast %227 : i32 to index
    %c0_68 = arith.constant 0 : index
    %229 = vector.load %arg14[%228, %c0_68] : memref<64x96xf32, #tpu.memory_space<vmem>>, vector<8x96xf32>
    %c0_69 = arith.constant 0 : index
    %c0_70 = arith.constant 0 : index
    %230 = vector.load %arg4[%c0_69, %c0_70] : memref<32x96xf32, #tpu.memory_space<vmem>>, vector<32x96xf32>
    %cst_71 = arith.constant dense<0.000000e+00> : vector<8x96xf32>
    %231 = tpu.matmul %223, %230, %cst_71 {dimension_numbers = #tpu.dot_dimension_numbers<[1], [0], [0], [1], [0, 0, 1, 1], [], []>} : vector<8x32xf32>, vector<32x96xf32>, vector<8x96xf32> -> vector<8x96xf32>
    %c0_72 = arith.constant 0 : index
    %c0_73 = arith.constant 0 : index
    %232 = vector.load %arg6[%c0_72, %c0_73] : memref<1x96xf32, #tpu.memory_space<vmem>>, vector<1x96xf32>
    %233 = vector.broadcast %232 : vector<1x96xf32> to vector<8x96xf32>
    %234 = arith.addf %231, %233 : vector<8x96xf32>
    %235 = vector.extract_strided_slice %229 {offsets = [0, 0], sizes = [8, 32], strides = [1, 1]} : vector<8x96xf32> to vector<8x32xf32>
    %236 = vector.extract_strided_slice %234 {offsets = [0, 0], sizes = [8, 32], strides = [1, 1]} : vector<8x96xf32> to vector<8x32xf32>
    %237 = arith.addf %235, %236 : vector<8x32xf32>
    %238 = arith.negf %237 : vector<8x32xf32>
    %239 = math.exp %238 : vector<8x32xf32>
    %cst_74 = arith.constant 1.000000e+00 : f32
    %240 = vector.broadcast %cst_74 : f32 to vector<8x32xf32>
    %241 = arith.addf %240, %239 : vector<8x32xf32>
    %242 = arith.divf %240, %241 : vector<8x32xf32>
    %243 = vector.extract_strided_slice %229 {offsets = [0, 32], sizes = [8, 32], strides = [1, 1]} : vector<8x96xf32> to vector<8x32xf32>
    %244 = vector.extract_strided_slice %234 {offsets = [0, 32], sizes = [8, 32], strides = [1, 1]} : vector<8x96xf32> to vector<8x32xf32>
    %245 = arith.addf %243, %244 : vector<8x32xf32>
    %246 = arith.negf %245 : vector<8x32xf32>
    %247 = math.exp %246 : vector<8x32xf32>
    %cst_75 = arith.constant 1.000000e+00 : f32
    %248 = vector.broadcast %cst_75 : f32 to vector<8x32xf32>
    %249 = arith.addf %248, %247 : vector<8x32xf32>
    %250 = arith.divf %248, %249 : vector<8x32xf32>
    %251 = vector.extract_strided_slice %229 {offsets = [0, 64], sizes = [8, 32], strides = [1, 1]} : vector<8x96xf32> to vector<8x32xf32>
    %252 = vector.extract_strided_slice %234 {offsets = [0, 64], sizes = [8, 32], strides = [1, 1]} : vector<8x96xf32> to vector<8x32xf32>
    %253 = arith.mulf %242, %252 : vector<8x32xf32>
    %254 = arith.addf %251, %253 : vector<8x32xf32>
    %255 = math.tanh %254 : vector<8x32xf32>
    %cst_76 = arith.constant 1.000000e+00 : f32
    %256 = vector.broadcast %cst_76 : f32 to vector<8x32xf32>
    %257 = arith.subf %256, %250 : vector<8x32xf32>
    %258 = arith.mulf %257, %255 : vector<8x32xf32>
    %259 = arith.mulf %250, %223 : vector<8x32xf32>
    %260 = arith.addf %258, %259 : vector<8x32xf32>
    %261 = vector.broadcast %c5_i32 : i32 to vector<8x1xi32>
    %262 = arith.cmpi slt, %261, %8 : vector<8x1xi32>
    %263 = vector.shape_cast %262 : vector<8x1xi1> to vector<8x1xi1>
    %264 = vector.broadcast %263 : vector<8x1xi1> to vector<8x32xi1>
    %265 = arith.select %264, %260, %223 : vector<8x32xi1>, vector<8x32xf32>
    %266 = arith.index_cast %227 : i32 to index
    %c0_77 = arith.constant 0 : index
    %267 = vector.load %arg15[%266, %c0_77] : memref<64x32xf32, #tpu.memory_space<vmem>>, vector<8x32xf32>
    tpu.vector_store %arg15[%266, %c0_77], %265 {strides = array<i32>} : memref<64x32xf32, #tpu.memory_space<vmem>>, vector<8x32xf32>,
    %c6_i32 = arith.constant 6 : i32
    %c8_i32_78 = arith.constant 8 : i32
    %268 = arith.muli %c6_i32, %c8_i32_78 : i32
    %269 = tpu.assume_multiple %268, 8 : i32
    %270 = arith.index_cast %269 : i32 to index
    %c0_79 = arith.constant 0 : index
    %271 = vector.load %arg14[%270, %c0_79] : memref<64x96xf32, #tpu.memory_space<vmem>>, vector<8x96xf32>
    %c0_80 = arith.constant 0 : index
    %c0_81 = arith.constant 0 : index
    %272 = vector.load %arg4[%c0_80, %c0_81] : memref<32x96xf32, #tpu.memory_space<vmem>>, vector<32x96xf32>
    %cst_82 = arith.constant dense<0.000000e+00> : vector<8x96xf32>
    %273 = tpu.matmul %265, %272, %cst_82 {dimension_numbers = #tpu.dot_dimension_numbers<[1], [0], [0], [1], [0, 0, 1, 1], [], []>} : vector<8x32xf32>, vector<32x96xf32>, vector<8x96xf32> -> vector<8x96xf32>
    %c0_83 = arith.constant 0 : index
    %c0_84 = arith.constant 0 : index
    %274 = vector.load %arg6[%c0_83, %c0_84] : memref<1x96xf32, #tpu.memory_space<vmem>>, vector<1x96xf32>
    %275 = vector.broadcast %274 : vector<1x96xf32> to vector<8x96xf32>
    %276 = arith.addf %273, %275 : vector<8x96xf32>
    %277 = vector.extract_strided_slice %271 {offsets = [0, 0], sizes = [8, 32], strides = [1, 1]} : vector<8x96xf32> to vector<8x32xf32>
    %278 = vector.extract_strided_slice %276 {offsets = [0, 0], sizes = [8, 32], strides = [1, 1]} : vector<8x96xf32> to vector<8x32xf32>
    %279 = arith.addf %277, %278 : vector<8x32xf32>
    %280 = arith.negf %279 : vector<8x32xf32>
    %281 = math.exp %280 : vector<8x32xf32>
    %cst_85 = arith.constant 1.000000e+00 : f32
    %282 = vector.broadcast %cst_85 : f32 to vector<8x32xf32>
    %283 = arith.addf %282, %281 : vector<8x32xf32>
    %284 = arith.divf %282, %283 : vector<8x32xf32>
    %285 = vector.extract_strided_slice %271 {offsets = [0, 32], sizes = [8, 32], strides = [1, 1]} : vector<8x96xf32> to vector<8x32xf32>
    %286 = vector.extract_strided_slice %276 {offsets = [0, 32], sizes = [8, 32], strides = [1, 1]} : vector<8x96xf32> to vector<8x32xf32>
    %287 = arith.addf %285, %286 : vector<8x32xf32>
    %288 = arith.negf %287 : vector<8x32xf32>
    %289 = math.exp %288 : vector<8x32xf32>
    %cst_86 = arith.constant 1.000000e+00 : f32
    %290 = vector.broadcast %cst_86 : f32 to vector<8x32xf32>
    %291 = arith.addf %290, %289 : vector<8x32xf32>
    %292 = arith.divf %290, %291 : vector<8x32xf32>
    %293 = vector.extract_strided_slice %271 {offsets = [0, 64], sizes = [8, 32], strides = [1, 1]} : vector<8x96xf32> to vector<8x32xf32>
    %294 = vector.extract_strided_slice %276 {offsets = [0, 64], sizes = [8, 32], strides = [1, 1]} : vector<8x96xf32> to vector<8x32xf32>
    %295 = arith.mulf %284, %294 : vector<8x32xf32>
    %296 = arith.addf %293, %295 : vector<8x32xf32>
    %297 = math.tanh %296 : vector<8x32xf32>
    %cst_87 = arith.constant 1.000000e+00 : f32
    %298 = vector.broadcast %cst_87 : f32 to vector<8x32xf32>
    %299 = arith.subf %298, %292 : vector<8x32xf32>
    %300 = arith.mulf %299, %297 : vector<8x32xf32>
    %301 = arith.mulf %292, %265 : vector<8x32xf32>
    %302 = arith.addf %300, %301 : vector<8x32xf32>
    %303 = vector.broadcast %c6_i32 : i32 to vector<8x1xi32>
    %304 = arith.cmpi slt, %303, %8 : vector<8x1xi32>
    %305 = vector.shape_cast %304 : vector<8x1xi1> to vector<8x1xi1>
    %306 = vector.broadcast %305 : vector<8x1xi1> to vector<8x32xi1>
    %307 = arith.select %306, %302, %265 : vector<8x32xi1>, vector<8x32xf32>
    %308 = arith.index_cast %269 : i32 to index
    %c0_88 = arith.constant 0 : index
    %309 = vector.load %arg15[%308, %c0_88] : memref<64x32xf32, #tpu.memory_space<vmem>>, vector<8x32xf32>
    tpu.vector_store %arg15[%308, %c0_88], %307 {strides = array<i32>} : memref<64x32xf32, #tpu.memory_space<vmem>>, vector<8x32xf32>,
    %c7_i32 = arith.constant 7 : i32
    %c8_i32_89 = arith.constant 8 : i32
    %310 = arith.muli %c7_i32, %c8_i32_89 : i32
    %311 = tpu.assume_multiple %310, 8 : i32
    %312 = arith.index_cast %311 : i32 to index
    %c0_90 = arith.constant 0 : index
    %313 = vector.load %arg14[%312, %c0_90] : memref<64x96xf32, #tpu.memory_space<vmem>>, vector<8x96xf32>
    %c0_91 = arith.constant 0 : index
    %c0_92 = arith.constant 0 : index
    %314 = vector.load %arg4[%c0_91, %c0_92] : memref<32x96xf32, #tpu.memory_space<vmem>>, vector<32x96xf32>
    %cst_93 = arith.constant dense<0.000000e+00> : vector<8x96xf32>
    %315 = tpu.matmul %307, %314, %cst_93 {dimension_numbers = #tpu.dot_dimension_numbers<[1], [0], [0], [1], [0, 0, 1, 1], [], []>} : vector<8x32xf32>, vector<32x96xf32>, vector<8x96xf32> -> vector<8x96xf32>
    %c0_94 = arith.constant 0 : index
    %c0_95 = arith.constant 0 : index
    %316 = vector.load %arg6[%c0_94, %c0_95] : memref<1x96xf32, #tpu.memory_space<vmem>>, vector<1x96xf32>
    %317 = vector.broadcast %316 : vector<1x96xf32> to vector<8x96xf32>
    %318 = arith.addf %315, %317 : vector<8x96xf32>
    %319 = vector.extract_strided_slice %313 {offsets = [0, 0], sizes = [8, 32], strides = [1, 1]} : vector<8x96xf32> to vector<8x32xf32>
    %320 = vector.extract_strided_slice %318 {offsets = [0, 0], sizes = [8, 32], strides = [1, 1]} : vector<8x96xf32> to vector<8x32xf32>
    %321 = arith.addf %319, %320 : vector<8x32xf32>
    %322 = arith.negf %321 : vector<8x32xf32>
    %323 = math.exp %322 : vector<8x32xf32>
    %cst_96 = arith.constant 1.000000e+00 : f32
    %324 = vector.broadcast %cst_96 : f32 to vector<8x32xf32>
    %325 = arith.addf %324, %323 : vector<8x32xf32>
    %326 = arith.divf %324, %325 : vector<8x32xf32>
    %327 = vector.extract_strided_slice %313 {offsets = [0, 32], sizes = [8, 32], strides = [1, 1]} : vector<8x96xf32> to vector<8x32xf32>
    %328 = vector.extract_strided_slice %318 {offsets = [0, 32], sizes = [8, 32], strides = [1, 1]} : vector<8x96xf32> to vector<8x32xf32>
    %329 = arith.addf %327, %328 : vector<8x32xf32>
    %330 = arith.negf %329 : vector<8x32xf32>
    %331 = math.exp %330 : vector<8x32xf32>
    %cst_97 = arith.constant 1.000000e+00 : f32
    %332 = vector.broadcast %cst_97 : f32 to vector<8x32xf32>
    %333 = arith.addf %332, %331 : vector<8x32xf32>
    %334 = arith.divf %332, %333 : vector<8x32xf32>
    %335 = vector.extract_strided_slice %313 {offsets = [0, 64], sizes = [8, 32], strides = [1, 1]} : vector<8x96xf32> to vector<8x32xf32>
    %336 = vector.extract_strided_slice %318 {offsets = [0, 64], sizes = [8, 32], strides = [1, 1]} : vector<8x96xf32> to vector<8x32xf32>
    %337 = arith.mulf %326, %336 : vector<8x32xf32>
    %338 = arith.addf %335, %337 : vector<8x32xf32>
    %339 = math.tanh %338 : vector<8x32xf32>
    %cst_98 = arith.constant 1.000000e+00 : f32
    %340 = vector.broadcast %cst_98 : f32 to vector<8x32xf32>
    %341 = arith.subf %340, %334 : vector<8x32xf32>
    %342 = arith.mulf %341, %339 : vector<8x32xf32>
    %343 = arith.mulf %334, %307 : vector<8x32xf32>
    %344 = arith.addf %342, %343 : vector<8x32xf32>
    %345 = vector.broadcast %c7_i32 : i32 to vector<8x1xi32>
    %346 = arith.cmpi slt, %345, %8 : vector<8x1xi32>
    %347 = vector.shape_cast %346 : vector<8x1xi1> to vector<8x1xi1>
    %348 = vector.broadcast %347 : vector<8x1xi1> to vector<8x32xi1>
    %349 = arith.select %348, %344, %307 : vector<8x32xi1>, vector<8x32xf32>
    %350 = arith.index_cast %311 : i32 to index
    %c0_99 = arith.constant 0 : index
    %351 = vector.load %arg15[%350, %c0_99] : memref<64x32xf32, #tpu.memory_space<vmem>>, vector<8x32xf32>
    tpu.vector_store %arg15[%350, %c0_99], %349 {strides = array<i32>} : memref<64x32xf32, #tpu.memory_space<vmem>>, vector<8x32xf32>,
    %c8_i32_100 = arith.constant 8 : i32
    %c0_101 = arith.constant 0 : index
    %c0_102 = arith.constant 0 : index
    %352 = vector.load %arg15[%c0_101, %c0_102] : memref<64x32xf32, #tpu.memory_space<vmem>>, vector<64x32xf32>
    %c0_103 = arith.constant 0 : index
    %c0_104 = arith.constant 0 : index
    %353 = vector.load %arg7[%c0_103, %c0_104] : memref<32x96xf32, #tpu.memory_space<vmem>>, vector<32x96xf32>
    %cst_105 = arith.constant dense<0.000000e+00> : vector<64x96xf32>
    %354 = tpu.matmul %352, %353, %cst_105 {dimension_numbers = #tpu.dot_dimension_numbers<[1], [0], [0], [1], [0, 0, 1, 1], [], []>} : vector<64x32xf32>, vector<32x96xf32>, vector<64x96xf32> -> vector<64x96xf32>
    %c0_106 = arith.constant 0 : index
    %c0_107 = arith.constant 0 : index
    %355 = vector.load %arg9[%c0_106, %c0_107] : memref<1x96xf32, #tpu.memory_space<vmem>>, vector<1x96xf32>
    %356 = vector.broadcast %355 : vector<1x96xf32> to vector<64x96xf32>
    %357 = arith.addf %354, %356 : vector<64x96xf32>
    %c0_108 = arith.constant 0 : index
    %c0_109 = arith.constant 0 : index
    %358 = vector.load %arg14[%c0_108, %c0_109] : memref<64x96xf32, #tpu.memory_space<vmem>>, vector<64x96xf32>
    tpu.vector_store %arg14[%c0_108, %c0_109], %357 {strides = array<i32>} : memref<64x96xf32, #tpu.memory_space<vmem>>, vector<64x96xf32>,
    %cst_110 = arith.constant 0.000000e+00 : f32
    %359 = vector.broadcast %cst_110 : f32 to vector<8x32xf32>
    %c0_i32_111 = arith.constant 0 : i32
    %c8_i32_112 = arith.constant 8 : i32
    %360 = arith.muli %c0_i32_111, %c8_i32_112 : i32
    %361 = tpu.assume_multiple %360, 8 : i32
    %362 = arith.index_cast %361 : i32 to index
    %c0_113 = arith.constant 0 : index
    %363 = vector.load %arg14[%362, %c0_113] : memref<64x96xf32, #tpu.memory_space<vmem>>, vector<8x96xf32>
    %c0_114 = arith.constant 0 : index
    %c0_115 = arith.constant 0 : index
    %364 = vector.load %arg8[%c0_114, %c0_115] : memref<32x96xf32, #tpu.memory_space<vmem>>, vector<32x96xf32>
    %cst_116 = arith.constant dense<0.000000e+00> : vector<8x96xf32>
    %365 = tpu.matmul %359, %364, %cst_116 {dimension_numbers = #tpu.dot_dimension_numbers<[1], [0], [0], [1], [0, 0, 1, 1], [], []>} : vector<8x32xf32>, vector<32x96xf32>, vector<8x96xf32> -> vector<8x96xf32>
    %c0_117 = arith.constant 0 : index
    %c0_118 = arith.constant 0 : index
    %366 = vector.load %arg10[%c0_117, %c0_118] : memref<1x96xf32, #tpu.memory_space<vmem>>, vector<1x96xf32>
    %367 = vector.broadcast %366 : vector<1x96xf32> to vector<8x96xf32>
    %368 = arith.addf %365, %367 : vector<8x96xf32>
    %369 = vector.extract_strided_slice %363 {offsets = [0, 0], sizes = [8, 32], strides = [1, 1]} : vector<8x96xf32> to vector<8x32xf32>
    %370 = vector.extract_strided_slice %368 {offsets = [0, 0], sizes = [8, 32], strides = [1, 1]} : vector<8x96xf32> to vector<8x32xf32>
    %371 = arith.addf %369, %370 : vector<8x32xf32>
    %372 = arith.negf %371 : vector<8x32xf32>
    %373 = math.exp %372 : vector<8x32xf32>
    %cst_119 = arith.constant 1.000000e+00 : f32
    %374 = vector.broadcast %cst_119 : f32 to vector<8x32xf32>
    %375 = arith.addf %374, %373 : vector<8x32xf32>
    %376 = arith.divf %374, %375 : vector<8x32xf32>
    %377 = vector.extract_strided_slice %363 {offsets = [0, 32], sizes = [8, 32], strides = [1, 1]} : vector<8x96xf32> to vector<8x32xf32>
    %378 = vector.extract_strided_slice %368 {offsets = [0, 32], sizes = [8, 32], strides = [1, 1]} : vector<8x96xf32> to vector<8x32xf32>
    %379 = arith.addf %377, %378 : vector<8x32xf32>
    %380 = arith.negf %379 : vector<8x32xf32>
    %381 = math.exp %380 : vector<8x32xf32>
    %cst_120 = arith.constant 1.000000e+00 : f32
    %382 = vector.broadcast %cst_120 : f32 to vector<8x32xf32>
    %383 = arith.addf %382, %381 : vector<8x32xf32>
    %384 = arith.divf %382, %383 : vector<8x32xf32>
    %385 = vector.extract_strided_slice %363 {offsets = [0, 64], sizes = [8, 32], strides = [1, 1]} : vector<8x96xf32> to vector<8x32xf32>
    %386 = vector.extract_strided_slice %368 {offsets = [0, 64], sizes = [8, 32], strides = [1, 1]} : vector<8x96xf32> to vector<8x32xf32>
    %387 = arith.mulf %376, %386 : vector<8x32xf32>
    %388 = arith.addf %385, %387 : vector<8x32xf32>
    %389 = math.tanh %388 : vector<8x32xf32>
    %cst_121 = arith.constant 1.000000e+00 : f32
    %390 = vector.broadcast %cst_121 : f32 to vector<8x32xf32>
    %391 = arith.subf %390, %384 : vector<8x32xf32>
    %392 = arith.mulf %391, %389 : vector<8x32xf32>
    %393 = arith.mulf %384, %359 : vector<8x32xf32>
    %394 = arith.addf %392, %393 : vector<8x32xf32>
    %395 = vector.broadcast %c0_i32_111 : i32 to vector<8x1xi32>
    %396 = arith.cmpi slt, %395, %8 : vector<8x1xi32>
    %397 = vector.shape_cast %396 : vector<8x1xi1> to vector<8x1xi1>
    %398 = vector.broadcast %397 : vector<8x1xi1> to vector<8x32xi1>
    %399 = arith.select %398, %394, %359 : vector<8x32xi1>, vector<8x32xf32>
    %c1_i32_122 = arith.constant 1 : i32
    %c8_i32_123 = arith.constant 8 : i32
    %400 = arith.muli %c1_i32_122, %c8_i32_123 : i32
    %401 = tpu.assume_multiple %400, 8 : i32
    %402 = arith.index_cast %401 : i32 to index
    %c0_124 = arith.constant 0 : index
    %403 = vector.load %arg14[%402, %c0_124] : memref<64x96xf32, #tpu.memory_space<vmem>>, vector<8x96xf32>
    %c0_125 = arith.constant 0 : index
    %c0_126 = arith.constant 0 : index
    %404 = vector.load %arg8[%c0_125, %c0_126] : memref<32x96xf32, #tpu.memory_space<vmem>>, vector<32x96xf32>
    %cst_127 = arith.constant dense<0.000000e+00> : vector<8x96xf32>
    %405 = tpu.matmul %399, %404, %cst_127 {dimension_numbers = #tpu.dot_dimension_numbers<[1], [0], [0], [1], [0, 0, 1, 1], [], []>} : vector<8x32xf32>, vector<32x96xf32>, vector<8x96xf32> -> vector<8x96xf32>
    %c0_128 = arith.constant 0 : index
    %c0_129 = arith.constant 0 : index
    %406 = vector.load %arg10[%c0_128, %c0_129] : memref<1x96xf32, #tpu.memory_space<vmem>>, vector<1x96xf32>
    %407 = vector.broadcast %406 : vector<1x96xf32> to vector<8x96xf32>
    %408 = arith.addf %405, %407 : vector<8x96xf32>
    %409 = vector.extract_strided_slice %403 {offsets = [0, 0], sizes = [8, 32], strides = [1, 1]} : vector<8x96xf32> to vector<8x32xf32>
    %410 = vector.extract_strided_slice %408 {offsets = [0, 0], sizes = [8, 32], strides = [1, 1]} : vector<8x96xf32> to vector<8x32xf32>
    %411 = arith.addf %409, %410 : vector<8x32xf32>
    %412 = arith.negf %411 : vector<8x32xf32>
    %413 = math.exp %412 : vector<8x32xf32>
    %cst_130 = arith.constant 1.000000e+00 : f32
    %414 = vector.broadcast %cst_130 : f32 to vector<8x32xf32>
    %415 = arith.addf %414, %413 : vector<8x32xf32>
    %416 = arith.divf %414, %415 : vector<8x32xf32>
    %417 = vector.extract_strided_slice %403 {offsets = [0, 32], sizes = [8, 32], strides = [1, 1]} : vector<8x96xf32> to vector<8x32xf32>
    %418 = vector.extract_strided_slice %408 {offsets = [0, 32], sizes = [8, 32], strides = [1, 1]} : vector<8x96xf32> to vector<8x32xf32>
    %419 = arith.addf %417, %418 : vector<8x32xf32>
    %420 = arith.negf %419 : vector<8x32xf32>
    %421 = math.exp %420 : vector<8x32xf32>
    %cst_131 = arith.constant 1.000000e+00 : f32
    %422 = vector.broadcast %cst_131 : f32 to vector<8x32xf32>
    %423 = arith.addf %422, %421 : vector<8x32xf32>
    %424 = arith.divf %422, %423 : vector<8x32xf32>
    %425 = vector.extract_strided_slice %403 {offsets = [0, 64], sizes = [8, 32], strides = [1, 1]} : vector<8x96xf32> to vector<8x32xf32>
    %426 = vector.extract_strided_slice %408 {offsets = [0, 64], sizes = [8, 32], strides = [1, 1]} : vector<8x96xf32> to vector<8x32xf32>
    %427 = arith.mulf %416, %426 : vector<8x32xf32>
    %428 = arith.addf %425, %427 : vector<8x32xf32>
    %429 = math.tanh %428 : vector<8x32xf32>
    %cst_132 = arith.constant 1.000000e+00 : f32
    %430 = vector.broadcast %cst_132 : f32 to vector<8x32xf32>
    %431 = arith.subf %430, %424 : vector<8x32xf32>
    %432 = arith.mulf %431, %429 : vector<8x32xf32>
    %433 = arith.mulf %424, %399 : vector<8x32xf32>
    %434 = arith.addf %432, %433 : vector<8x32xf32>
    %435 = vector.broadcast %c1_i32_122 : i32 to vector<8x1xi32>
    %436 = arith.cmpi slt, %435, %8 : vector<8x1xi32>
    %437 = vector.shape_cast %436 : vector<8x1xi1> to vector<8x1xi1>
    %438 = vector.broadcast %437 : vector<8x1xi1> to vector<8x32xi1>
    %439 = arith.select %438, %434, %399 : vector<8x32xi1>, vector<8x32xf32>
    %c2_i32_133 = arith.constant 2 : i32
    %c8_i32_134 = arith.constant 8 : i32
    %440 = arith.muli %c2_i32_133, %c8_i32_134 : i32
    %441 = tpu.assume_multiple %440, 8 : i32
    %442 = arith.index_cast %441 : i32 to index
    %c0_135 = arith.constant 0 : index
    %443 = vector.load %arg14[%442, %c0_135] : memref<64x96xf32, #tpu.memory_space<vmem>>, vector<8x96xf32>
    %c0_136 = arith.constant 0 : index
    %c0_137 = arith.constant 0 : index
    %444 = vector.load %arg8[%c0_136, %c0_137] : memref<32x96xf32, #tpu.memory_space<vmem>>, vector<32x96xf32>
    %cst_138 = arith.constant dense<0.000000e+00> : vector<8x96xf32>
    %445 = tpu.matmul %439, %444, %cst_138 {dimension_numbers = #tpu.dot_dimension_numbers<[1], [0], [0], [1], [0, 0, 1, 1], [], []>} : vector<8x32xf32>, vector<32x96xf32>, vector<8x96xf32> -> vector<8x96xf32>
    %c0_139 = arith.constant 0 : index
    %c0_140 = arith.constant 0 : index
    %446 = vector.load %arg10[%c0_139, %c0_140] : memref<1x96xf32, #tpu.memory_space<vmem>>, vector<1x96xf32>
    %447 = vector.broadcast %446 : vector<1x96xf32> to vector<8x96xf32>
    %448 = arith.addf %445, %447 : vector<8x96xf32>
    %449 = vector.extract_strided_slice %443 {offsets = [0, 0], sizes = [8, 32], strides = [1, 1]} : vector<8x96xf32> to vector<8x32xf32>
    %450 = vector.extract_strided_slice %448 {offsets = [0, 0], sizes = [8, 32], strides = [1, 1]} : vector<8x96xf32> to vector<8x32xf32>
    %451 = arith.addf %449, %450 : vector<8x32xf32>
    %452 = arith.negf %451 : vector<8x32xf32>
    %453 = math.exp %452 : vector<8x32xf32>
    %cst_141 = arith.constant 1.000000e+00 : f32
    %454 = vector.broadcast %cst_141 : f32 to vector<8x32xf32>
    %455 = arith.addf %454, %453 : vector<8x32xf32>
    %456 = arith.divf %454, %455 : vector<8x32xf32>
    %457 = vector.extract_strided_slice %443 {offsets = [0, 32], sizes = [8, 32], strides = [1, 1]} : vector<8x96xf32> to vector<8x32xf32>
    %458 = vector.extract_strided_slice %448 {offsets = [0, 32], sizes = [8, 32], strides = [1, 1]} : vector<8x96xf32> to vector<8x32xf32>
    %459 = arith.addf %457, %458 : vector<8x32xf32>
    %460 = arith.negf %459 : vector<8x32xf32>
    %461 = math.exp %460 : vector<8x32xf32>
    %cst_142 = arith.constant 1.000000e+00 : f32
    %462 = vector.broadcast %cst_142 : f32 to vector<8x32xf32>
    %463 = arith.addf %462, %461 : vector<8x32xf32>
    %464 = arith.divf %462, %463 : vector<8x32xf32>
    %465 = vector.extract_strided_slice %443 {offsets = [0, 64], sizes = [8, 32], strides = [1, 1]} : vector<8x96xf32> to vector<8x32xf32>
    %466 = vector.extract_strided_slice %448 {offsets = [0, 64], sizes = [8, 32], strides = [1, 1]} : vector<8x96xf32> to vector<8x32xf32>
    %467 = arith.mulf %456, %466 : vector<8x32xf32>
    %468 = arith.addf %465, %467 : vector<8x32xf32>
    %469 = math.tanh %468 : vector<8x32xf32>
    %cst_143 = arith.constant 1.000000e+00 : f32
    %470 = vector.broadcast %cst_143 : f32 to vector<8x32xf32>
    %471 = arith.subf %470, %464 : vector<8x32xf32>
    %472 = arith.mulf %471, %469 : vector<8x32xf32>
    %473 = arith.mulf %464, %439 : vector<8x32xf32>
    %474 = arith.addf %472, %473 : vector<8x32xf32>
    %475 = vector.broadcast %c2_i32_133 : i32 to vector<8x1xi32>
    %476 = arith.cmpi slt, %475, %8 : vector<8x1xi32>
    %477 = vector.shape_cast %476 : vector<8x1xi1> to vector<8x1xi1>
    %478 = vector.broadcast %477 : vector<8x1xi1> to vector<8x32xi1>
    %479 = arith.select %478, %474, %439 : vector<8x32xi1>, vector<8x32xf32>
    %c3_i32_144 = arith.constant 3 : i32
    %c8_i32_145 = arith.constant 8 : i32
    %480 = arith.muli %c3_i32_144, %c8_i32_145 : i32
    %481 = tpu.assume_multiple %480, 8 : i32
    %482 = arith.index_cast %481 : i32 to index
    %c0_146 = arith.constant 0 : index
    %483 = vector.load %arg14[%482, %c0_146] : memref<64x96xf32, #tpu.memory_space<vmem>>, vector<8x96xf32>
    %c0_147 = arith.constant 0 : index
    %c0_148 = arith.constant 0 : index
    %484 = vector.load %arg8[%c0_147, %c0_148] : memref<32x96xf32, #tpu.memory_space<vmem>>, vector<32x96xf32>
    %cst_149 = arith.constant dense<0.000000e+00> : vector<8x96xf32>
    %485 = tpu.matmul %479, %484, %cst_149 {dimension_numbers = #tpu.dot_dimension_numbers<[1], [0], [0], [1], [0, 0, 1, 1], [], []>} : vector<8x32xf32>, vector<32x96xf32>, vector<8x96xf32> -> vector<8x96xf32>
    %c0_150 = arith.constant 0 : index
    %c0_151 = arith.constant 0 : index
    %486 = vector.load %arg10[%c0_150, %c0_151] : memref<1x96xf32, #tpu.memory_space<vmem>>, vector<1x96xf32>
    %487 = vector.broadcast %486 : vector<1x96xf32> to vector<8x96xf32>
    %488 = arith.addf %485, %487 : vector<8x96xf32>
    %489 = vector.extract_strided_slice %483 {offsets = [0, 0], sizes = [8, 32], strides = [1, 1]} : vector<8x96xf32> to vector<8x32xf32>
    %490 = vector.extract_strided_slice %488 {offsets = [0, 0], sizes = [8, 32], strides = [1, 1]} : vector<8x96xf32> to vector<8x32xf32>
    %491 = arith.addf %489, %490 : vector<8x32xf32>
    %492 = arith.negf %491 : vector<8x32xf32>
    %493 = math.exp %492 : vector<8x32xf32>
    %cst_152 = arith.constant 1.000000e+00 : f32
    %494 = vector.broadcast %cst_152 : f32 to vector<8x32xf32>
    %495 = arith.addf %494, %493 : vector<8x32xf32>
    %496 = arith.divf %494, %495 : vector<8x32xf32>
    %497 = vector.extract_strided_slice %483 {offsets = [0, 32], sizes = [8, 32], strides = [1, 1]} : vector<8x96xf32> to vector<8x32xf32>
    %498 = vector.extract_strided_slice %488 {offsets = [0, 32], sizes = [8, 32], strides = [1, 1]} : vector<8x96xf32> to vector<8x32xf32>
    %499 = arith.addf %497, %498 : vector<8x32xf32>
    %500 = arith.negf %499 : vector<8x32xf32>
    %501 = math.exp %500 : vector<8x32xf32>
    %cst_153 = arith.constant 1.000000e+00 : f32
    %502 = vector.broadcast %cst_153 : f32 to vector<8x32xf32>
    %503 = arith.addf %502, %501 : vector<8x32xf32>
    %504 = arith.divf %502, %503 : vector<8x32xf32>
    %505 = vector.extract_strided_slice %483 {offsets = [0, 64], sizes = [8, 32], strides = [1, 1]} : vector<8x96xf32> to vector<8x32xf32>
    %506 = vector.extract_strided_slice %488 {offsets = [0, 64], sizes = [8, 32], strides = [1, 1]} : vector<8x96xf32> to vector<8x32xf32>
    %507 = arith.mulf %496, %506 : vector<8x32xf32>
    %508 = arith.addf %505, %507 : vector<8x32xf32>
    %509 = math.tanh %508 : vector<8x32xf32>
    %cst_154 = arith.constant 1.000000e+00 : f32
    %510 = vector.broadcast %cst_154 : f32 to vector<8x32xf32>
    %511 = arith.subf %510, %504 : vector<8x32xf32>
    %512 = arith.mulf %511, %509 : vector<8x32xf32>
    %513 = arith.mulf %504, %479 : vector<8x32xf32>
    %514 = arith.addf %512, %513 : vector<8x32xf32>
    %515 = vector.broadcast %c3_i32_144 : i32 to vector<8x1xi32>
    %516 = arith.cmpi slt, %515, %8 : vector<8x1xi32>
    %517 = vector.shape_cast %516 : vector<8x1xi1> to vector<8x1xi1>
    %518 = vector.broadcast %517 : vector<8x1xi1> to vector<8x32xi1>
    %519 = arith.select %518, %514, %479 : vector<8x32xi1>, vector<8x32xf32>
    %c4_i32_155 = arith.constant 4 : i32
    %c8_i32_156 = arith.constant 8 : i32
    %520 = arith.muli %c4_i32_155, %c8_i32_156 : i32
    %521 = tpu.assume_multiple %520, 8 : i32
    %522 = arith.index_cast %521 : i32 to index
    %c0_157 = arith.constant 0 : index
    %523 = vector.load %arg14[%522, %c0_157] : memref<64x96xf32, #tpu.memory_space<vmem>>, vector<8x96xf32>
    %c0_158 = arith.constant 0 : index
    %c0_159 = arith.constant 0 : index
    %524 = vector.load %arg8[%c0_158, %c0_159] : memref<32x96xf32, #tpu.memory_space<vmem>>, vector<32x96xf32>
    %cst_160 = arith.constant dense<0.000000e+00> : vector<8x96xf32>
    %525 = tpu.matmul %519, %524, %cst_160 {dimension_numbers = #tpu.dot_dimension_numbers<[1], [0], [0], [1], [0, 0, 1, 1], [], []>} : vector<8x32xf32>, vector<32x96xf32>, vector<8x96xf32> -> vector<8x96xf32>
    %c0_161 = arith.constant 0 : index
    %c0_162 = arith.constant 0 : index
    %526 = vector.load %arg10[%c0_161, %c0_162] : memref<1x96xf32, #tpu.memory_space<vmem>>, vector<1x96xf32>
    %527 = vector.broadcast %526 : vector<1x96xf32> to vector<8x96xf32>
    %528 = arith.addf %525, %527 : vector<8x96xf32>
    %529 = vector.extract_strided_slice %523 {offsets = [0, 0], sizes = [8, 32], strides = [1, 1]} : vector<8x96xf32> to vector<8x32xf32>
    %530 = vector.extract_strided_slice %528 {offsets = [0, 0], sizes = [8, 32], strides = [1, 1]} : vector<8x96xf32> to vector<8x32xf32>
    %531 = arith.addf %529, %530 : vector<8x32xf32>
    %532 = arith.negf %531 : vector<8x32xf32>
    %533 = math.exp %532 : vector<8x32xf32>
    %cst_163 = arith.constant 1.000000e+00 : f32
    %534 = vector.broadcast %cst_163 : f32 to vector<8x32xf32>
    %535 = arith.addf %534, %533 : vector<8x32xf32>
    %536 = arith.divf %534, %535 : vector<8x32xf32>
    %537 = vector.extract_strided_slice %523 {offsets = [0, 32], sizes = [8, 32], strides = [1, 1]} : vector<8x96xf32> to vector<8x32xf32>
    %538 = vector.extract_strided_slice %528 {offsets = [0, 32], sizes = [8, 32], strides = [1, 1]} : vector<8x96xf32> to vector<8x32xf32>
    %539 = arith.addf %537, %538 : vector<8x32xf32>
    %540 = arith.negf %539 : vector<8x32xf32>
    %541 = math.exp %540 : vector<8x32xf32>
    %cst_164 = arith.constant 1.000000e+00 : f32
    %542 = vector.broadcast %cst_164 : f32 to vector<8x32xf32>
    %543 = arith.addf %542, %541 : vector<8x32xf32>
    %544 = arith.divf %542, %543 : vector<8x32xf32>
    %545 = vector.extract_strided_slice %523 {offsets = [0, 64], sizes = [8, 32], strides = [1, 1]} : vector<8x96xf32> to vector<8x32xf32>
    %546 = vector.extract_strided_slice %528 {offsets = [0, 64], sizes = [8, 32], strides = [1, 1]} : vector<8x96xf32> to vector<8x32xf32>
    %547 = arith.mulf %536, %546 : vector<8x32xf32>
    %548 = arith.addf %545, %547 : vector<8x32xf32>
    %549 = math.tanh %548 : vector<8x32xf32>
    %cst_165 = arith.constant 1.000000e+00 : f32
    %550 = vector.broadcast %cst_165 : f32 to vector<8x32xf32>
    %551 = arith.subf %550, %544 : vector<8x32xf32>
    %552 = arith.mulf %551, %549 : vector<8x32xf32>
    %553 = arith.mulf %544, %519 : vector<8x32xf32>
    %554 = arith.addf %552, %553 : vector<8x32xf32>
    %555 = vector.broadcast %c4_i32_155 : i32 to vector<8x1xi32>
    %556 = arith.cmpi slt, %555, %8 : vector<8x1xi32>
    %557 = vector.shape_cast %556 : vector<8x1xi1> to vector<8x1xi1>
    %558 = vector.broadcast %557 : vector<8x1xi1> to vector<8x32xi1>
    %559 = arith.select %558, %554, %519 : vector<8x32xi1>, vector<8x32xf32>
    %c5_i32_166 = arith.constant 5 : i32
    %c8_i32_167 = arith.constant 8 : i32
    %560 = arith.muli %c5_i32_166, %c8_i32_167 : i32
    %561 = tpu.assume_multiple %560, 8 : i32
    %562 = arith.index_cast %561 : i32 to index
    %c0_168 = arith.constant 0 : index
    %563 = vector.load %arg14[%562, %c0_168] : memref<64x96xf32, #tpu.memory_space<vmem>>, vector<8x96xf32>
    %c0_169 = arith.constant 0 : index
    %c0_170 = arith.constant 0 : index
    %564 = vector.load %arg8[%c0_169, %c0_170] : memref<32x96xf32, #tpu.memory_space<vmem>>, vector<32x96xf32>
    %cst_171 = arith.constant dense<0.000000e+00> : vector<8x96xf32>
    %565 = tpu.matmul %559, %564, %cst_171 {dimension_numbers = #tpu.dot_dimension_numbers<[1], [0], [0], [1], [0, 0, 1, 1], [], []>} : vector<8x32xf32>, vector<32x96xf32>, vector<8x96xf32> -> vector<8x96xf32>
    %c0_172 = arith.constant 0 : index
    %c0_173 = arith.constant 0 : index
    %566 = vector.load %arg10[%c0_172, %c0_173] : memref<1x96xf32, #tpu.memory_space<vmem>>, vector<1x96xf32>
    %567 = vector.broadcast %566 : vector<1x96xf32> to vector<8x96xf32>
    %568 = arith.addf %565, %567 : vector<8x96xf32>
    %569 = vector.extract_strided_slice %563 {offsets = [0, 0], sizes = [8, 32], strides = [1, 1]} : vector<8x96xf32> to vector<8x32xf32>
    %570 = vector.extract_strided_slice %568 {offsets = [0, 0], sizes = [8, 32], strides = [1, 1]} : vector<8x96xf32> to vector<8x32xf32>
    %571 = arith.addf %569, %570 : vector<8x32xf32>
    %572 = arith.negf %571 : vector<8x32xf32>
    %573 = math.exp %572 : vector<8x32xf32>
    %cst_174 = arith.constant 1.000000e+00 : f32
    %574 = vector.broadcast %cst_174 : f32 to vector<8x32xf32>
    %575 = arith.addf %574, %573 : vector<8x32xf32>
    %576 = arith.divf %574, %575 : vector<8x32xf32>
    %577 = vector.extract_strided_slice %563 {offsets = [0, 32], sizes = [8, 32], strides = [1, 1]} : vector<8x96xf32> to vector<8x32xf32>
    %578 = vector.extract_strided_slice %568 {offsets = [0, 32], sizes = [8, 32], strides = [1, 1]} : vector<8x96xf32> to vector<8x32xf32>
    %579 = arith.addf %577, %578 : vector<8x32xf32>
    %580 = arith.negf %579 : vector<8x32xf32>
    %581 = math.exp %580 : vector<8x32xf32>
    %cst_175 = arith.constant 1.000000e+00 : f32
    %582 = vector.broadcast %cst_175 : f32 to vector<8x32xf32>
    %583 = arith.addf %582, %581 : vector<8x32xf32>
    %584 = arith.divf %582, %583 : vector<8x32xf32>
    %585 = vector.extract_strided_slice %563 {offsets = [0, 64], sizes = [8, 32], strides = [1, 1]} : vector<8x96xf32> to vector<8x32xf32>
    %586 = vector.extract_strided_slice %568 {offsets = [0, 64], sizes = [8, 32], strides = [1, 1]} : vector<8x96xf32> to vector<8x32xf32>
    %587 = arith.mulf %576, %586 : vector<8x32xf32>
    %588 = arith.addf %585, %587 : vector<8x32xf32>
    %589 = math.tanh %588 : vector<8x32xf32>
    %cst_176 = arith.constant 1.000000e+00 : f32
    %590 = vector.broadcast %cst_176 : f32 to vector<8x32xf32>
    %591 = arith.subf %590, %584 : vector<8x32xf32>
    %592 = arith.mulf %591, %589 : vector<8x32xf32>
    %593 = arith.mulf %584, %559 : vector<8x32xf32>
    %594 = arith.addf %592, %593 : vector<8x32xf32>
    %595 = vector.broadcast %c5_i32_166 : i32 to vector<8x1xi32>
    %596 = arith.cmpi slt, %595, %8 : vector<8x1xi32>
    %597 = vector.shape_cast %596 : vector<8x1xi1> to vector<8x1xi1>
    %598 = vector.broadcast %597 : vector<8x1xi1> to vector<8x32xi1>
    %599 = arith.select %598, %594, %559 : vector<8x32xi1>, vector<8x32xf32>
    %c6_i32_177 = arith.constant 6 : i32
    %c8_i32_178 = arith.constant 8 : i32
    %600 = arith.muli %c6_i32_177, %c8_i32_178 : i32
    %601 = tpu.assume_multiple %600, 8 : i32
    %602 = arith.index_cast %601 : i32 to index
    %c0_179 = arith.constant 0 : index
    %603 = vector.load %arg14[%602, %c0_179] : memref<64x96xf32, #tpu.memory_space<vmem>>, vector<8x96xf32>
    %c0_180 = arith.constant 0 : index
    %c0_181 = arith.constant 0 : index
    %604 = vector.load %arg8[%c0_180, %c0_181] : memref<32x96xf32, #tpu.memory_space<vmem>>, vector<32x96xf32>
    %cst_182 = arith.constant dense<0.000000e+00> : vector<8x96xf32>
    %605 = tpu.matmul %599, %604, %cst_182 {dimension_numbers = #tpu.dot_dimension_numbers<[1], [0], [0], [1], [0, 0, 1, 1], [], []>} : vector<8x32xf32>, vector<32x96xf32>, vector<8x96xf32> -> vector<8x96xf32>
    %c0_183 = arith.constant 0 : index
    %c0_184 = arith.constant 0 : index
    %606 = vector.load %arg10[%c0_183, %c0_184] : memref<1x96xf32, #tpu.memory_space<vmem>>, vector<1x96xf32>
    %607 = vector.broadcast %606 : vector<1x96xf32> to vector<8x96xf32>
    %608 = arith.addf %605, %607 : vector<8x96xf32>
    %609 = vector.extract_strided_slice %603 {offsets = [0, 0], sizes = [8, 32], strides = [1, 1]} : vector<8x96xf32> to vector<8x32xf32>
    %610 = vector.extract_strided_slice %608 {offsets = [0, 0], sizes = [8, 32], strides = [1, 1]} : vector<8x96xf32> to vector<8x32xf32>
    %611 = arith.addf %609, %610 : vector<8x32xf32>
    %612 = arith.negf %611 : vector<8x32xf32>
    %613 = math.exp %612 : vector<8x32xf32>
    %cst_185 = arith.constant 1.000000e+00 : f32
    %614 = vector.broadcast %cst_185 : f32 to vector<8x32xf32>
    %615 = arith.addf %614, %613 : vector<8x32xf32>
    %616 = arith.divf %614, %615 : vector<8x32xf32>
    %617 = vector.extract_strided_slice %603 {offsets = [0, 32], sizes = [8, 32], strides = [1, 1]} : vector<8x96xf32> to vector<8x32xf32>
    %618 = vector.extract_strided_slice %608 {offsets = [0, 32], sizes = [8, 32], strides = [1, 1]} : vector<8x96xf32> to vector<8x32xf32>
    %619 = arith.addf %617, %618 : vector<8x32xf32>
    %620 = arith.negf %619 : vector<8x32xf32>
    %621 = math.exp %620 : vector<8x32xf32>
    %cst_186 = arith.constant 1.000000e+00 : f32
    %622 = vector.broadcast %cst_186 : f32 to vector<8x32xf32>
    %623 = arith.addf %622, %621 : vector<8x32xf32>
    %624 = arith.divf %622, %623 : vector<8x32xf32>
    %625 = vector.extract_strided_slice %603 {offsets = [0, 64], sizes = [8, 32], strides = [1, 1]} : vector<8x96xf32> to vector<8x32xf32>
    %626 = vector.extract_strided_slice %608 {offsets = [0, 64], sizes = [8, 32], strides = [1, 1]} : vector<8x96xf32> to vector<8x32xf32>
    %627 = arith.mulf %616, %626 : vector<8x32xf32>
    %628 = arith.addf %625, %627 : vector<8x32xf32>
    %629 = math.tanh %628 : vector<8x32xf32>
    %cst_187 = arith.constant 1.000000e+00 : f32
    %630 = vector.broadcast %cst_187 : f32 to vector<8x32xf32>
    %631 = arith.subf %630, %624 : vector<8x32xf32>
    %632 = arith.mulf %631, %629 : vector<8x32xf32>
    %633 = arith.mulf %624, %599 : vector<8x32xf32>
    %634 = arith.addf %632, %633 : vector<8x32xf32>
    %635 = vector.broadcast %c6_i32_177 : i32 to vector<8x1xi32>
    %636 = arith.cmpi slt, %635, %8 : vector<8x1xi32>
    %637 = vector.shape_cast %636 : vector<8x1xi1> to vector<8x1xi1>
    %638 = vector.broadcast %637 : vector<8x1xi1> to vector<8x32xi1>
    %639 = arith.select %638, %634, %599 : vector<8x32xi1>, vector<8x32xf32>
    %c7_i32_188 = arith.constant 7 : i32
    %c8_i32_189 = arith.constant 8 : i32
    %640 = arith.muli %c7_i32_188, %c8_i32_189 : i32
    %641 = tpu.assume_multiple %640, 8 : i32
    %642 = arith.index_cast %641 : i32 to index
    %c0_190 = arith.constant 0 : index
    %643 = vector.load %arg14[%642, %c0_190] : memref<64x96xf32, #tpu.memory_space<vmem>>, vector<8x96xf32>
    %c0_191 = arith.constant 0 : index
    %c0_192 = arith.constant 0 : index
    %644 = vector.load %arg8[%c0_191, %c0_192] : memref<32x96xf32, #tpu.memory_space<vmem>>, vector<32x96xf32>
    %cst_193 = arith.constant dense<0.000000e+00> : vector<8x96xf32>
    %645 = tpu.matmul %639, %644, %cst_193 {dimension_numbers = #tpu.dot_dimension_numbers<[1], [0], [0], [1], [0, 0, 1, 1], [], []>} : vector<8x32xf32>, vector<32x96xf32>, vector<8x96xf32> -> vector<8x96xf32>
    %c0_194 = arith.constant 0 : index
    %c0_195 = arith.constant 0 : index
    %646 = vector.load %arg10[%c0_194, %c0_195] : memref<1x96xf32, #tpu.memory_space<vmem>>, vector<1x96xf32>
    %647 = vector.broadcast %646 : vector<1x96xf32> to vector<8x96xf32>
    %648 = arith.addf %645, %647 : vector<8x96xf32>
    %649 = vector.extract_strided_slice %643 {offsets = [0, 0], sizes = [8, 32], strides = [1, 1]} : vector<8x96xf32> to vector<8x32xf32>
    %650 = vector.extract_strided_slice %648 {offsets = [0, 0], sizes = [8, 32], strides = [1, 1]} : vector<8x96xf32> to vector<8x32xf32>
    %651 = arith.addf %649, %650 : vector<8x32xf32>
    %652 = arith.negf %651 : vector<8x32xf32>
    %653 = math.exp %652 : vector<8x32xf32>
    %cst_196 = arith.constant 1.000000e+00 : f32
    %654 = vector.broadcast %cst_196 : f32 to vector<8x32xf32>
    %655 = arith.addf %654, %653 : vector<8x32xf32>
    %656 = arith.divf %654, %655 : vector<8x32xf32>
    %657 = vector.extract_strided_slice %643 {offsets = [0, 32], sizes = [8, 32], strides = [1, 1]} : vector<8x96xf32> to vector<8x32xf32>
    %658 = vector.extract_strided_slice %648 {offsets = [0, 32], sizes = [8, 32], strides = [1, 1]} : vector<8x96xf32> to vector<8x32xf32>
    %659 = arith.addf %657, %658 : vector<8x32xf32>
    %660 = arith.negf %659 : vector<8x32xf32>
    %661 = math.exp %660 : vector<8x32xf32>
    %cst_197 = arith.constant 1.000000e+00 : f32
    %662 = vector.broadcast %cst_197 : f32 to vector<8x32xf32>
    %663 = arith.addf %662, %661 : vector<8x32xf32>
    %664 = arith.divf %662, %663 : vector<8x32xf32>
    %665 = vector.extract_strided_slice %643 {offsets = [0, 64], sizes = [8, 32], strides = [1, 1]} : vector<8x96xf32> to vector<8x32xf32>
    %666 = vector.extract_strided_slice %648 {offsets = [0, 64], sizes = [8, 32], strides = [1, 1]} : vector<8x96xf32> to vector<8x32xf32>
    %667 = arith.mulf %656, %666 : vector<8x32xf32>
    %668 = arith.addf %665, %667 : vector<8x32xf32>
    %669 = math.tanh %668 : vector<8x32xf32>
    %cst_198 = arith.constant 1.000000e+00 : f32
    %670 = vector.broadcast %cst_198 : f32 to vector<8x32xf32>
    %671 = arith.subf %670, %664 : vector<8x32xf32>
    %672 = arith.mulf %671, %669 : vector<8x32xf32>
    %673 = arith.mulf %664, %639 : vector<8x32xf32>
    %674 = arith.addf %672, %673 : vector<8x32xf32>
    %675 = vector.broadcast %c7_i32_188 : i32 to vector<8x1xi32>
    %676 = arith.cmpi slt, %675, %8 : vector<8x1xi32>
    %677 = vector.shape_cast %676 : vector<8x1xi1> to vector<8x1xi1>
    %678 = vector.broadcast %677 : vector<8x1xi1> to vector<8x32xi1>
    %679 = arith.select %678, %674, %639 : vector<8x32xi1>, vector<8x32xf32>
    %c8_i32_199 = arith.constant 8 : i32
    %680 = tpu.concatenate %349, %679 in 0 : vector<8x32xf32>, vector<8x32xf32> -> vector<16x32xf32>
    %c0_200 = arith.constant 0 : index
    %c0_201 = arith.constant 0 : index
    %681 = vector.load %arg11[%c0_200, %c0_201] : memref<32x4xf32, #tpu.memory_space<vmem>>, vector<32x4xf32>
    %cst_202 = arith.constant dense<0.000000e+00> : vector<16x4xf32>
    %682 = tpu.matmul %680, %681, %cst_202 {dimension_numbers = #tpu.dot_dimension_numbers<[1], [0], [0], [1], [0, 0, 1, 1], [], []>} : vector<16x32xf32>, vector<32x4xf32>, vector<16x4xf32> -> vector<16x4xf32>
    %c0_203 = arith.constant 0 : index
    %c0_204 = arith.constant 0 : index
    %683 = vector.load %arg12[%c0_203, %c0_204] : memref<1x4xf32, #tpu.memory_space<vmem>>, vector<1x4xf32>
    %684 = vector.broadcast %683 : vector<1x4xf32> to vector<16x4xf32>
    %685 = arith.addf %682, %684 : vector<16x4xf32>
    %c0_205 = arith.constant 0 : index
    %c0_206 = arith.constant 0 : index
    %686 = vector.load %arg13[%c0_205, %c0_206] : memref<16x4xf32, #tpu.memory_space<vmem>>, vector<16x4xf32>
    tpu.vector_store %arg13[%c0_205, %c0_206], %685 {strides = array<i32>} : memref<16x4xf32, #tpu.memory_space<vmem>>, vector<16x4xf32>,
    return
  }
}

</mosaic_0001>

<bundles_post_ra>
// kernel: embedding_gru_forward.1
= control target key start
LH: loop header
LB: loop body
LE: loop exit
PB: predicated region body
PF: predicated region fallthrough
CT: control target
= control target key end

     0   :  { %v3223_v0 = vmov 0   ;;  %v52_v57 = vlaneseq  ;;  %v3224_v61 = vmov 1.0   ;;  %s3228_s14 = smov 64   ;;  %s3844_s0 = inlined_call_operand.vmem [shape: s32[64,1], index: 0, kind: input, shape index: {}]   ;;  %s3845_s2 = inlined_call_operand.vmem [shape: f32[256,16], index: 2, kind: input, shape index: {}]   ;;  %s3846_s3 = inlined_call_operand.vmem [shape: f32[16,96], index: 3, kind: input, shape index: {}]   ;;  %s3847_s4 = inlined_call_operand.vmem [shape: f32[32,96], index: 4, kind: input, shape index: {}]   ;;  %s3848_s5 = inlined_call_operand.vmem [shape: f32[1,96], index: 5, kind: input, shape index: {}]   ;;  %s3849_s6 = inlined_call_operand.vmem [shape: f32[1,96], index: 6, kind: input, shape index: {}]   ;;  %s3850_s1 = inlined_call_operand.vmem [shape: s32[8,1], index: 1, kind: input, shape index: {}]   ;;  %s3851_s7 = inlined_call_operand.vmem [shape: f32[32,96], index: 7, kind: input, shape index: {}]   ;;  %s3852_s9 = inlined_call_operand.vmem [shape: f32[1,96], index: 9, kind: input, shape index: {}]   ;;  %s3853_s8 = inlined_call_operand.vmem [shape: f32[32,96], index: 8, kind: input, shape index: {}]   ;;  %s3854_s10 = inlined_call_operand.vmem [shape: f32[1,96], index: 10, kind: input, shape index: {}]   ;;  %s3855_s11 = inlined_call_operand.vmem [shape: f32[32,4], index: 11, kind: input, shape index: {}]   ;;  %s3856_s12 = inlined_call_operand.vmem [shape: f32[1,4], index: 12, kind: input, shape index: {}]   ;;  %s3857_s13 = inlined_call_operand.vmem [shape: f32[16,4], index: 13, kind: output, shape index: {}]  }
   0x1   :  { %3126 = vset.pattern.permute.xlu1 %v3223_v0  ;;  %3125 = vset.pattern.permute.xlu0 %v3223_v0  ;;  %v46_v1 = vld [vmem:[%s3844_s0 + $0x10] sm:$0xff]  ;;  %v44_v2 = vld [vmem:[%s3844_s0] sm:$0xff]  ;;  %v47_v3 = vld [vmem:[%s3844_s0 + $0x18] sm:$0xff] }
   0x2   :  { %62 = vperm.xlu1 %3126, %v46_v1   ;;  %56 = vperm.xlu0 %3125, %v44_v2   ;;  %v45_v4 = vld [vmem:[%s3844_s0 + $0x8] sm:$0xff]  ;;  %v143_v5 = vld [vmem:[%s3845_s2 + $0x80] sm:$0xff]  ;;  %v145_v11 = vld [vmem:[%s3845_s2 + $0x90] sm:$0xff]  ;;  %v53_v58 = vand.u32 127, %v52_v57 }
   0x3   :  { %v144_v6 = vld [vmem:[%s3845_s2 + $0x88] sm:$0xff]  ;;  %v127_v7 = vld [vmem:[%s3845_s2] sm:$0xff]  ;;  %v146_v12 = vld [vmem:[%s3845_s2 + $0x98] sm:$0xff] }
   0x4   :  { %v128_v8 = vld [vmem:[%s3845_s2 + $0x8] sm:$0xff]  ;;  %v2970_v9 = vpack.c.bf16 %v144_v6, %v143_v5  ;;  %v129_v13 = vld [vmem:[%s3845_s2 + $0x10] sm:$0xff]  ;;  %v2974_v14 = vpack.c.bf16 %v146_v12, %v145_v11  ;;  %v130_v15 = vld [vmem:[%s3845_s2 + $0x18] sm:$0xff]  ;;  %v54_v59 = vadd.s32 128, %v53_v58 }
   0x5   :  { %v2972_v10 = vpack.c.bf16 %v128_v8, %v127_v7  ;;  %v147_v16 = vld [vmem:[%s3845_s2 + $0xa0] sm:$0xff]  ;;  %v148_v17 = vld [vmem:[%s3845_s2 + $0xa8] sm:$0xff]  ;;  %v2976_v20 = vpack.c.bf16 %v130_v15, %v129_v13  ;;  %v149_v24 = vld [vmem:[%s3845_s2 + $0xb0] sm:$0xff] }
   0x6   :  { %65 = vperm.xlu1 %3126, %v47_v3   ;;  %59 = vperm.xlu0 %3125, %v45_v4   ;;  %v49_v18 = vld [vmem:[%s3844_s0 + $0x28] sm:$0xff]  ;;  %v48_v19 = vld [vmem:[%s3844_s0 + $0x20] sm:$0xff]  ;;  %v2978_v21 = vpack.c.bf16 %v148_v17, %v147_v16  ;;  %v150_v25 = vld [vmem:[%s3845_s2 + $0xb8] sm:$0xff]  ;;  %v3227_v16 = vmov 0.0  }
   0x7   :  { %2971 = vmatprep.subr.bf16.mxu0 %v2970_v9  ;;  %v131_v22 = vld [vmem:[%s3845_s2 + $0x20] sm:$0xff]  ;;  %v132_v23 = vld [vmem:[%s3845_s2 + $0x28] sm:$0xff]  ;;  %v51_v26 = vld [vmem:[%s3844_s0 + $0x38] sm:$0xff]  ;;  %v2982_v29 = vpack.c.bf16 %v150_v25, %v149_v24  ;;  %v3225_v9 = vmov 0.0|0.0  }
   0x8   :  { %2973 = vmatpush3.bf16.msra.mxu0 %v2972_v10  ;;  %v50_v27 = vld [vmem:[%s3844_s0 + $0x30] sm:$0xff]  ;;  %v2980_v28 = vpack.c.bf16 %v132_v23, %v131_v22  ;;  %v134_v31 = vld [vmem:[%s3845_s2 + $0x38] sm:$0xff]  ;;  %v151_v32 = vld [vmem:[%s3845_s2 + $0xc0] sm:$0xff] }
   0x9   :  { %2975 = vmatprep.subr.bf16.mxu0 %v2974_v14  ;;  %v133_v30 = vld [vmem:[%s3845_s2 + $0x30] sm:$0xff]  ;;  %v152_v33 = vld [vmem:[%s3845_s2 + $0xc8] sm:$0xff]  ;;  %v135_v36 = vld [vmem:[%s3845_s2 + $0x40] sm:$0xff] }
   0xa   :  { %71 = vperm.xlu1 %3126, %v49_v18   ;;  %68 = vperm.xlu0 %3125, %v48_v19   ;;  %v2984_v34 = vpack.c.bf16 %v134_v31, %v133_v30  ;;  %v2986_v35 = vpack.c.bf16 %v152_v33, %v151_v32  ;;  %v136_v37 = vld [vmem:[%s3845_s2 + $0x48] sm:$0xff]  ;;  %v153_v38 = vld [vmem:[%s3845_s2 + $0xd0] sm:$0xff]  ;;  %v154_v39 = vld [vmem:[%s3845_s2 + $0xd8] sm:$0xff] }
   0xb   :  { %v2988_v40 = vpack.c.bf16 %v136_v37, %v135_v36  ;;  %v2990_v41 = vpack.c.bf16 %v154_v39, %v153_v38  ;;  %v137_v42 = vld [vmem:[%s3845_s2 + $0x50] sm:$0xff]  ;;  %v138_v43 = vld [vmem:[%s3845_s2 + $0x58] sm:$0xff]  ;;  %v155_v44 = vld [vmem:[%s3845_s2 + $0xe0] sm:$0xff] }
   0xc   :  { %2977 = vmatpush3.bf16.msra.mxu0 %v2976_v20  ;;  %v156_v45 = vld [vmem:[%s3845_s2 + $0xe8] sm:$0xff]  ;;  %v2992_v46 = vpack.c.bf16 %v138_v43, %v137_v42  ;;  %v139_v48 = vld [vmem:[%s3845_s2 + $0x60] sm:$0xff]  ;;  %v157_v50 = vld [vmem:[%s3845_s2 + $0xf0] sm:$0xff] }
   0xd   :  { %2979 = vmatprep.subr.bf16.mxu0 %v2978_v21  ;;  %v2994_v47 = vpack.c.bf16 %v156_v45, %v155_v44  ;;  %v140_v49 = vld [vmem:[%s3845_s2 + $0x68] sm:$0xff]  ;;  %v158_v51 = vld [vmem:[%s3845_s2 + $0xf8] sm:$0xff]  ;;  %v141_v54 = vld [vmem:[%s3845_s2 + $0x70] sm:$0xff] }
   0xe   :  { %77 = vperm.xlu1 %3126, %v51_v26   ;;  %74 = vperm.xlu0 %3125, %v50_v27   ;;  %v2996_v52 = vpack.c.bf16 %v140_v49, %v139_v48  ;;  %v2998_v53 = vpack.c.bf16 %v158_v51, %v157_v50  ;;  %v142_v55 = vld [vmem:[%s3845_s2 + $0x78] sm:$0xff]  ;;  %v265_v6 = vld [vmem:[%s3846_s3] sm:$0xff]  ;;  %v266_v7 = vld [vmem:[%s3846_s3 + $0x8] sm:$0xff] }
   0xf   :  { %v3000_v56 = vpack.c.bf16 %v142_v55, %v141_v54  ;;  %v3002_v8 = vpack.c.bf16 %v266_v7, %v265_v6  ;;  %v414_v10 = vld [vmem:[%s3847_s4] sm:$0xff]  ;;  %v415_v11 = vld [vmem:[%s3847_s4 + $0x8] sm:$0xff]  ;;  %v416_v13 = vld [vmem:[%s3847_s4 + $0x10] sm:$0xff] }
  0x10   :  { %2981 = vmatpush3.bf16.msra.mxu0 %v2980_v28  ;;  %v3436_v12 = vpack.c.bf16 %v415_v11, %v414_v10  ;;  %v417_v14 = vld [vmem:[%s3847_s4 + $0x18] sm:$0xff] }
  0x11   :  { %2983 = vmatprep.subr.bf16.mxu0 %v2982_v29  ;;  %3003 = vmatprep.subr.bf16.mxu1 %v3002_v8  ;;  %v3446_v15 = vpack.c.bf16 %v417_v14, %v416_v13 }
  0x12   :  { %3005 = vmatpush3.bf16.msra.mxu1 %v3002_v8 }
  0x13   :  { %3006 = vmatprep.subr.bf16.mxu1 %v3225_v9 }
  0x14   :  { %2985 = vmatpush3.bf16.msra.mxu0 %v2984_v34 }
  0x15   :  { %2987 = vmatprep.subr.bf16.mxu0 %v2986_v35 }
  0x18   :  { %2989 = vmatpush3.bf16.msra.mxu0 %v2988_v40 }
  0x19   :  { %2991 = vmatprep.subr.bf16.mxu0 %v2990_v41  ;;  %v2523_v41 = vld [vmem:[%s3848_s5] ss:$0 sm:$0xff] }
  0x1c   :  { %2993 = vmatpush3.bf16.msra.mxu0 %v2992_v46 }
  0x1d   :  { %2995 = vmatprep.subr.bf16.mxu0 %v2994_v47 }
  0x20   :  { %2997 = vmatpush3.bf16.msra.mxu0 %v2996_v52 }
  0x21   :  { %2999 = vmatprep.subr.bf16.mxu0 %v2998_v53 }
  0x24   :  { %3001 = vmatpush3.bf16.msra.mxu0 %v3000_v56 }
  0x25   :  { %3042 = vmatprep.subr.bf16.mxu0 %v3225_v9 }
  0x81   :  { %v57_v60 = vpop.permute.xlu0 %56  ;;  %v63_v62 = vpop.permute.xlu1 %62 }
  0x82   :  { %vm79_vm0 = vcmp.eq.s32.totalorder %v57_v60, %v53_v58  ;;  %vm80_vm1 = vcmp.eq.s32.totalorder %v57_v60, %v54_v59  ;;  %vm84_vm2 = vcmp.eq.s32.totalorder %v63_v62, %v54_v59  ;;  %vm83_vm5 = vcmp.eq.s32.totalorder %v63_v62, %v53_v58 }
  0x83   :  { %2507 = vmatprep.mubr.msk.f32.mxu0 %vm80_vm1, %v3224_v61  ;;  %vm274_vm1 = vcmask 130048  }
  0x84   :  { %2508 = vmatmul.mubr.msk.f32.vlgmr.msra.gmra.mrb[0].mxu0 %vm79_vm0, %v3224_v61  ;;  %vm3226_vm0 = vmmov 0  }
  0x85   :  { %v60_v63 = vpop.permute.xlu0 %59  ;;  %v66_v1 = vpop.permute.xlu1 %65  ;;  %3044 = vmatpush3.bf16.msra.mxu0 %v3436_v12 }
  0x86   :  { %vm81_vm3 = vcmp.eq.s32.totalorder %v60_v63, %v53_v58  ;;  %vm82_vm4 = vcmp.eq.s32.totalorder %v60_v63, %v54_v59  ;;  %vm86_vm6 = vcmp.eq.s32.totalorder %v66_v1, %v54_v59  ;;  %vm85_vm7 = vcmp.eq.s32.totalorder %v66_v1, %v53_v58  ;;  %3045 = vmatprep.subr.bf16.mxu0 %v3225_v9 }
  0x87   :  { %2509 = vmatprep.mubr.msk.f32.mxu0 %vm82_vm4, %v3224_v61 }
  0x88   :  { %2510 = vmatmul.mubr.msk.f32.gmra.mrb[2].mxu0 %vm81_vm3, %v3224_v61 }
  0x89   :  { %2511 = vmatprep.mubr.msk.f32.mxu0 %vm84_vm2, %v3224_v61  ;;  %v69_v2 = vpop.permute.xlu0 %68  ;;  %v72_v3 = vpop.permute.xlu1 %71  ;;  %3047 = vmatpush3.bf16.msra.mxu0 %v3446_v15  ;;  %vm404_vm2 = vcmask 785408  }
  0x8a   :  { %vm88_vm8 = vcmp.eq.s32.totalorder %v69_v2, %v54_v59  ;;  %vm87_vm9 = vcmp.eq.s32.totalorder %v69_v2, %v53_v58  ;;  %vm90_vm10 = vcmp.eq.s32.totalorder %v72_v3, %v54_v59  ;;  %vm89_vm11 = vcmp.eq.s32.totalorder %v72_v3, %v53_v58 }
  0x8c   :  { %2512 = vmatmul.mubr.msk.f32.gmra.mrb[4].mxu0 %vm83_vm5, %v3224_v61  ;;  %vm425_vm5 = vcmask 261120  }
  0x8d   :  { %2513 = vmatprep.mubr.msk.f32.mxu0 %vm86_vm6, %v3224_v61  ;;  %v75_v4 = vpop.permute.xlu0 %74  ;;  %v78_v5 = vpop.permute.xlu1 %77 }
  0x8e   :  { %vm92_vm12 = vcmp.eq.s32.totalorder %v75_v4, %v54_v59  ;;  %vm91_vm13 = vcmp.eq.s32.totalorder %v75_v4, %v53_v58  ;;  %vm94_vm14 = vcmp.eq.s32.totalorder %v78_v5, %v54_v59  ;;  %vm93_vm15 = vcmp.eq.s32.totalorder %v78_v5, %v53_v58  ;;  %v3484_v58 = vld [vmem:[%s3849_s6] ss:$0 sm:$0xff] }
  0x8f   :  { %v3489_v59 = vld [vmem:[%s3850_s1] sm:$0xff]  ;;  %s3229_s1 = smov 96  }
  0x90   :  { %2514 = vmatmul.mubr.msk.f32.gmra.mrb[6].mxu0 %vm85_vm7, %v3224_v61  ;;  %vm525_vm3 = vcmp.gt.s32.totalorder %v3489_v59, 0  ;;  %vm648_vm6 = vcmp.gt.s32.totalorder %v3489_v59, 1 }
  0x91   :  { %2515 = vmatprep.mubr.msk.f32.mxu0 %vm88_vm8, %v3224_v61  ;;  %v526_v63 = vsel %vm525_vm3, 1, %v3223_v0  ;;  %vm772_vm8 = vcmp.gt.s32.totalorder %v3489_v59, 2 }
  0x94   :  { %2516 = vmatmul.mubr.msk.f32.gmra.mrb[8].mxu0 %vm87_vm9, %v3224_v61 }
  0x95   :  { %2517 = vmatprep.mubr.msk.f32.mxu0 %vm90_vm10, %v3224_v61  ;;  %vm896_vm10 = vcmp.gt.s32.totalorder %v3489_v59, 3 }
  0x98   :  { %2518 = vmatmul.mubr.msk.f32.gmra.mrb[10].mxu0 %vm89_vm11, %v3224_v61 }
  0x99   :  { %2519 = vmatprep.mubr.msk.f32.mxu0 %vm92_vm12, %v3224_v61  ;;  %vm1020_vm12 = vcmp.gt.s32.totalorder %v3489_v59, 4 }
  0x9c   :  { %2520 = vmatmul.mubr.msk.f32.gmra.mrb[12].mxu0 %vm91_vm13, %v3224_v61 }
  0x9d   :  { %2521 = vmatprep.mubr.msk.f32.mxu0 %vm94_vm14, %v3224_v61  ;;  %vm1144_vm14 = vcmp.gt.s32.totalorder %v3489_v59, 5 }
  0xa0   :  { %2522 = vmatmul.mubr.msk.f32.gmra.mrb[14].mxu0 %vm93_vm15, %v3224_v61 }
  0xa1   :  { %2837 = vmatprep.mubr.msk.f32.mxu0 %vm3226_vm0, %v3227_v16 }
 0x157   :  { %v2615_v17 = vpop.f32.mrb[0].mxu0 }
 0x158   :  { %v2616_v18 = vpop.f32.mrb[1].mxu0 }
 0x159   :  { %v2617_v19 = vadd.f32 %v2616_v18, %v2615_v17 }
 0x15b   :  { %v2618_v20 = vpop.f32.mrb[2].mxu0  ;;  %2751 = vmatprep.mubr.msk.f32.mxu1 %vm274_vm1, %v2617_v19 }
 0x15c   :  { %v2619_v21 = vpop.f32.mrb[3].mxu0 }
 0x15d   :  { %v2620_v22 = vadd.f32 %v2619_v21, %v2618_v20 }
 0x15f   :  { %v2621_v23 = vpop.f32.mrb[4].mxu0  ;;  %2752 = vmatmul.mubr.msk.f32.vlgmr.msra.gmra.mrb[0].mxu1 %vm274_vm1, %v2620_v22 }
 0x160   :  { %v2622_v24 = vpop.f32.mrb[5].mxu0  ;;  %3008 = vmatpush3.bf16.msra.mxu1 %v3436_v12 }
 0x161   :  { %v2623_v25 = vadd.f32 %v2622_v24, %v2621_v23  ;;  %3009 = vmatprep.subr.bf16.mxu1 %v3225_v9 }
 0x163   :  { %v2624_v26 = vpop.f32.mrb[6].mxu0  ;;  %2754 = vmatprep.mubr.msk.f32.mxu1 %vm274_vm1, %v2623_v25 }
 0x164   :  { %v2625_v27 = vpop.f32.mrb[7].mxu0  ;;  %3011 = vmatpush3.bf16.msra.mxu1 %v3446_v15 }
 0x165   :  { %v2626_v28 = vadd.f32 %v2625_v27, %v2624_v26  ;;  %3012 = vmatprep.subr.bf16.mxu1 %v3225_v9  ;;  %v649_v27 = vsel %vm648_vm6, 1, %v3223_v0  ;;  %vm1392_vm6 = vcmp.gt.s32.totalorder %v3489_v59, 7 }
 0x167   :  { %v2627_v29 = vpop.f32.mrb[8].mxu0  ;;  %2755 = vmatmul.mubr.msk.f32.gmra.mrb[2].mxu1 %vm274_vm1, %v2626_v28 }
 0x168   :  { %v2628_v30 = vpop.f32.mrb[9].mxu0 }
 0x169   :  { %v2629_v31 = vadd.f32 %v2628_v30, %v2627_v29 }
 0x16b   :  { %v2630_v32 = vpop.f32.mrb[10].mxu0  ;;  %2757 = vmatprep.mubr.msk.f32.mxu1 %vm274_vm1, %v2629_v31 }
 0x16c   :  { %v2631_v33 = vpop.f32.mrb[11].mxu0 }
 0x16d   :  { %v2632_v34 = vadd.f32 %v2631_v33, %v2630_v32 }
 0x16f   :  { %v2633_v35 = vpop.f32.mrb[12].mxu0  ;;  %2758 = vmatmul.mubr.msk.f32.gmra.mrb[4].mxu1 %vm274_vm1, %v2632_v34 }
 0x170   :  { %v2634_v36 = vpop.f32.mrb[13].mxu0 }
 0x171   :  { %v2635_v37 = vadd.f32 %v2634_v36, %v2633_v35 }
 0x173   :  { %v2636_v38 = vpop.f32.mrb[14].mxu0  ;;  %2760 = vmatprep.mubr.msk.f32.mxu1 %vm274_vm1, %v2635_v37 }
 0x174   :  { %v2637_v39 = vpop.f32.mrb[15].mxu0 }
 0x175   :  { %v2638_v40 = vadd.f32 %v2637_v39, %v2636_v38 }
 0x177   :  { %2761 = vmatmul.mubr.msk.f32.gmra.mrb[6].mxu1 %vm274_vm1, %v2638_v40  ;;  %vm1268_vm1 = vcmp.gt.s32.totalorder %v3489_v59, 6 }
 0x178   :  { %2771 = vmatprep.mubr.msk.f32.mxu1 %vm3226_vm0, %v3227_v16 }
 0x17b   :  { %2772 = vmatmul.mubr.f32.vlgmr.msra.gmra.mrb[8].mxu1 %v3227_v16 }
 0x17c   :  { %3014 = vmatpush3.bf16.msra.mxu1 %v3436_v12  ;;  %2782 = vmatprep.mubr.msk.f32.mxu1 %vm3226_vm0, %v3227_v16 }
 0x17d   :  { %3015 = vmatprep.subr.bf16.mxu1 %v3225_v9 }
 0x180   :  { %3017 = vmatpush3.bf16.msra.mxu1 %v3446_v15 }
 0x181   :  { %3018 = vmatprep.subr.bf16.mxu1 %v3225_v9 }
 0x232   :  { %v2753_v42 = vpop.f32.mrb[0].mxu1 }
 0x233   :  { %v371_v43 = vadd.f32 %v2753_v42, %v2523_v41  ;;  %v365_v44 = vpop.f32.mrb[1].mxu1 }
 0x234   :  { %v366_v45 = vadd.f32 %v2523_v41, %v365_v44 }
 0x235   :  { %406 = vst.msk [vmem:[#allocation2 + $0x8] sm:$0xff] %vm404_vm2, %v371_v43 }
 0x236   :  { %405 = vst.msk [vmem:[#allocation2] sm:$0xff] %vm404_vm2, %v366_v45 }
 0x23a   :  { %v2756_v46 = vpop.f32.mrb[2].mxu1 }
 0x23b   :  { %v381_v47 = vadd.f32 %v2756_v46, %v2523_v41  ;;  %v375_v48 = vpop.f32.mrb[3].mxu1 }
 0x23c   :  { %v376_v49 = vadd.f32 %v2523_v41, %v375_v48  ;;  %v538_v28 = vld [vmem:[#allocation2 + $0x8] sm:$0xff] }
 0x23d   :  { %408 = vst.msk [vmem:[#allocation2 + $0x18] sm:$0xff] %vm404_vm2, %v381_v47  ;;  %v413_v1 = vld [vmem:[#allocation2] sm:$0xff] }
 0x23e   :  { %407 = vst.msk [vmem:[#allocation2 + $0x10] sm:$0xff] %vm404_vm2, %v376_v49 }
 0x242   :  { %v2759_v50 = vpop.f32.mrb[4].mxu1 }
 0x243   :  { %v391_v51 = vadd.f32 %v2759_v50, %v2523_v41  ;;  %v385_v52 = vpop.f32.mrb[5].mxu1  ;;  %v773_v50 = vsel %vm772_vm8, 1, %v3223_v0 }
 0x244   :  { %v386_v53 = vadd.f32 %v2523_v41, %v385_v52 }
 0x245   :  { %410 = vst.msk [vmem:[#allocation2 + $0x28] sm:$0xff] %vm404_vm2, %v391_v51  ;;  %v662_v51 = vld [vmem:[#allocation2 + $0x10] sm:$0xff] }
 0x246   :  { %409 = vst.msk [vmem:[#allocation2 + $0x20] sm:$0xff] %vm404_vm2, %v386_v53 }
 0x24a   :  { %v2762_v54 = vpop.f32.mrb[6].mxu1 }
 0x24b   :  { %v401_v55 = vadd.f32 %v2762_v54, %v2523_v41  ;;  %v395_v56 = vpop.f32.mrb[7].mxu1 }
 0x24c   :  { %v396_v57 = vadd.f32 %v2523_v41, %v395_v56 }
 0x24d   :  { %412 = vst.msk [vmem:[#allocation2 + $0x38] sm:$0xff] %vm404_vm2, %v401_v55 }
 0x24e   :  { %411 = vst.msk [vmem:[#allocation2 + $0x30] sm:$0xff] %vm404_vm2, %v396_v57  ;;  %v495_v60 = vpop.f32.mrb[8].mxu1 }
 0x24f   :  { %v496_v61 = vadd.f32 %v3484_v58, %v495_v60  ;;  %v2773_v62 = vpop.f32.mrb[9].mxu1 }
 0x251   :  { %507 = vrot.lane.b32.xlu0 %v496_v61, %s3228_s14  ;;  %v499_v2 = vadd.f32 %v496_v61, %v413_v1 }
 0x253   :  { %v2533_v3 = vmul.f32 -1.442695, %v499_v2 }
 0x255   :  { %528 = vperm.xlu0 %3125, %v526_v63   ;;  %3127 = vpow2.f32 %v2533_v3 }
 0x25f   :  { %v3128_v4 = vpop.eup %3127 }
 0x260   :  { %v503_v5 = vadd.f32 1.0, %v3128_v4 }
 0x262   :  { %3129 = vrcp.f32 %v503_v5 }
 0x26c   :  { %v3130_v6 = vpop.eup %3129 }
 0x26d   :  { %v517_v14 = vsub.f32 1.0, %v3130_v6  ;;  %v523_v19 = vmul.f32 0.0, %v3130_v6 }
 0x2c3   :  { %v508_v7 = vpop.permute.xlu0 %507 }
 0x2c4   :  { %v510_v8 = vmul.f32 %v3130_v6, %v508_v7 }
 0x2c6   :  { %512 = vrot.lane.b32.xlu1 %v510_v8, %s3228_s14 }
 0x2d4   :  { %v3499_v18 = vpop.permute.xlu0 %528 }
 0x2d5   :  { %vm530_vm4 = vcmp.eq.s32.totalorder %v3499_v18, 1 }
 0x338   :  { %v513_v10 = vpop.permute.xlu1 %512 }
 0x339   :  { %v515_v11 = vadd.f32 %v513_v10, %v413_v1 }
 0x33b   :  { %3131 = vtanh.f32 %v515_v11 }
 0x345   :  { %v3132_v13 = vpop.eup %3131 }
 0x346   :  { %519 = vrot.lane.b32.xlu1 %v3132_v13, %s3229_s1 }
 0x3b8   :  { %v520_v17 = vpop.permute.xlu1 %519 }
 0x3b9   :  { %v522_v20 = vmul.f32 %v520_v17, %v517_v14  ;;  %v897_v14 = vsel %vm896_vm10, 1, %v3223_v0  ;;  %v786_v17 = vld [vmem:[#allocation2 + $0x18] sm:$0xff] }
 0x3bb   :  { %v524_v21 = vadd.f32 %v523_v19, %v522_v20 }
 0x3bd   :  { %v531_v22 = vsel %vm530_vm4, %v524_v21, 0.0 }
 0x3be   :  { %533 = vrot.lane.b32.xlu0 %v531_v22, %s3229_s1 }
 0x430   :  { %v534_v23 = vpop.permute.xlu0 %533 }
 0x431   :  { %536 = vst.msk [vmem:[#allocation3] sm:$0xff] %vm425_vm5, %v534_v23  ;;  %2783 = vmatmul.mubr.msk.f32.vlgmr.msra.gmra.mrb[10].mxu1 %vm425_vm5, %v534_v23 }
 0x432   :  { %3020 = vmatpush3.bf16.msra.mxu1 %v3436_v12  ;;  %2793 = vmatprep.mubr.msk.f32.mxu1 %vm3226_vm0, %v3227_v16 }
 0x433   :  { %3021 = vmatprep.subr.bf16.mxu1 %v3225_v9 }
 0x436   :  { %3023 = vmatpush3.bf16.msra.mxu1 %v3446_v15 }
 0x437   :  { %3024 = vmatprep.subr.bf16.mxu1 %v3225_v9 }
 0x504   :  { %v618_v24 = vpop.f32.mrb[10].mxu1 }
 0x505   :  { %v619_v25 = vadd.f32 %v3484_v58, %v618_v24  ;;  %v2784_v26 = vpop.f32.mrb[11].mxu1 }
 0x507   :  { %630 = vrot.lane.b32.xlu1 %v619_v25, %s3228_s14  ;;  %v622_v29 = vadd.f32 %v619_v25, %v538_v28 }
 0x509   :  { %v2536_v30 = vmul.f32 -1.442695, %v622_v29 }
 0x50b   :  { %651 = vperm.xlu1 %3126, %v649_v27   ;;  %3133 = vpow2.f32 %v2536_v30 }
 0x515   :  { %v3134_v31 = vpop.eup %3133 }
 0x516   :  { %v626_v32 = vadd.f32 1.0, %v3134_v31 }
 0x518   :  { %3135 = vrcp.f32 %v626_v32 }
 0x522   :  { %v3136_v33 = vpop.eup %3135 }
 0x523   :  { %v640_v39 = vsub.f32 1.0, %v3136_v33  ;;  %v646_v42 = vmul.f32 %v3136_v33, %v531_v22 }
 0x579   :  { %v631_v34 = vpop.permute.xlu1 %630 }
 0x57a   :  { %v633_v35 = vmul.f32 %v3136_v33, %v631_v34 }
 0x57c   :  { %635 = vrot.lane.b32.xlu0 %v633_v35, %s3228_s14 }
 0x58a   :  { %v3519_v41 = vpop.permute.xlu1 %651 }
 0x58b   :  { %vm653_vm7 = vcmp.eq.s32.totalorder %v3519_v41, 1 }
 0x5ee   :  { %v636_v36 = vpop.permute.xlu0 %635 }
 0x5ef   :  { %v638_v37 = vadd.f32 %v636_v36, %v538_v28 }
 0x5f1   :  { %3137 = vtanh.f32 %v638_v37 }
 0x5fb   :  { %v3138_v38 = vpop.eup %3137 }
 0x5fc   :  { %642 = vrot.lane.b32.xlu0 %v3138_v38, %s3229_s1 }
 0x66e   :  { %v643_v40 = vpop.permute.xlu0 %642 }
 0x66f   :  { %v645_v43 = vmul.f32 %v643_v40, %v640_v39  ;;  %v1021_v40 = vsel %vm1020_vm12, 1, %v3223_v0 }
 0x671   :  { %v647_v44 = vadd.f32 %v646_v42, %v645_v43  ;;  %v910_v42 = vld [vmem:[#allocation2 + $0x20] sm:$0xff] }
 0x673   :  { %v654_v45 = vsel %vm653_vm7, %v647_v44, %v531_v22 }
 0x674   :  { %656 = vrot.lane.b32.xlu1 %v654_v45, %s3229_s1 }
 0x6e6   :  { %v657_v46 = vpop.permute.xlu1 %656 }
 0x6e7   :  { %660 = vst.msk [vmem:[#allocation3 + $0x8] sm:$0xff] %vm425_vm5, %v657_v46  ;;  %2794 = vmatmul.mubr.msk.f32.vlgmr.msra.gmra.mrb[12].mxu1 %vm425_vm5, %v657_v46 }
 0x6e8   :  { %3026 = vmatpush3.bf16.msra.mxu1 %v3436_v12  ;;  %2804 = vmatprep.mubr.msk.f32.mxu1 %vm3226_vm0, %v3227_v16 }
 0x6e9   :  { %3027 = vmatprep.subr.bf16.mxu1 %v3225_v9 }
 0x6ec   :  { %3029 = vmatpush3.bf16.msra.mxu1 %v3446_v15 }
 0x6ed   :  { %3030 = vmatprep.subr.bf16.mxu1 %v3225_v9 }
 0x7ba   :  { %v742_v47 = vpop.f32.mrb[12].mxu1 }
 0x7bb   :  { %v743_v48 = vadd.f32 %v3484_v58, %v742_v47  ;;  %v2795_v49 = vpop.f32.mrb[13].mxu1 }
 0x7bd   :  { %754 = vrot.lane.b32.xlu0 %v743_v48, %s3228_s14  ;;  %v746_v52 = vadd.f32 %v743_v48, %v662_v51 }
 0x7bf   :  { %v2539_v53 = vmul.f32 -1.442695, %v746_v52 }
 0x7c1   :  { %775 = vperm.xlu0 %3125, %v773_v50   ;;  %3139 = vpow2.f32 %v2539_v53 }
 0x7cb   :  { %v3140_v54 = vpop.eup %3139 }
 0x7cc   :  { %v750_v55 = vadd.f32 1.0, %v3140_v54 }
 0x7ce   :  { %3141 = vrcp.f32 %v750_v55 }
 0x7d8   :  { %v3142_v56 = vpop.eup %3141 }
 0x7d9   :  { %v764_v1 = vsub.f32 1.0, %v3142_v56  ;;  %v770_v4 = vmul.f32 %v3142_v56, %v654_v45 }
 0x82f   :  { %v755_v57 = vpop.permute.xlu0 %754 }
 0x830   :  { %v757_v60 = vmul.f32 %v3142_v56, %v755_v57 }
 0x832   :  { %759 = vrot.lane.b32.xlu1 %v757_v60, %s3228_s14 }
 0x840   :  { %v3539_v3 = vpop.permute.xlu0 %775 }
 0x841   :  { %vm777_vm9 = vcmp.eq.s32.totalorder %v3539_v3, 1 }
 0x8a4   :  { %v760_v61 = vpop.permute.xlu1 %759 }
 0x8a5   :  { %v762_v62 = vadd.f32 %v760_v61, %v662_v51 }
 0x8a7   :  { %3143 = vtanh.f32 %v762_v62 }
 0x8b1   :  { %v3144_v63 = vpop.eup %3143 }
 0x8b2   :  { %766 = vrot.lane.b32.xlu1 %v3144_v63, %s3229_s1 }
 0x924   :  { %v767_v2 = vpop.permute.xlu1 %766 }
 0x925   :  { %v769_v5 = vmul.f32 %v767_v2, %v764_v1 }
 0x927   :  { %v771_v6 = vadd.f32 %v770_v4, %v769_v5  ;;  %v1145_v4 = vsel %vm1144_vm14, 1, %v3223_v0 }
 0x929   :  { %v778_v7 = vsel %vm777_vm9, %v771_v6, %v654_v45 }
 0x92a   :  { %780 = vrot.lane.b32.xlu0 %v778_v7, %s3229_s1 }
 0x99c   :  { %v781_v8 = vpop.permute.xlu0 %780 }
 0x99d   :  { %784 = vst.msk [vmem:[#allocation3 + $0x10] sm:$0xff] %vm425_vm5, %v781_v8  ;;  %2805 = vmatmul.mubr.msk.f32.vlgmr.msra.gmra.mrb[14].mxu1 %vm425_vm5, %v781_v8 }
 0x99e   :  { %3032 = vmatpush3.bf16.msra.mxu1 %v3436_v12  ;;  %2815 = vmatprep.mubr.msk.f32.mxu1 %vm3226_vm0, %v3227_v16 }
 0x99f   :  { %3033 = vmatprep.subr.bf16.mxu1 %v3225_v9 }
 0x9a2   :  { %3035 = vmatpush3.bf16.msra.mxu1 %v3446_v15 }
 0x9a3   :  { %3036 = vmatprep.subr.bf16.mxu1 %v3225_v9 }
 0xa70   :  { %v866_v10 = vpop.f32.mrb[14].mxu1 }
 0xa71   :  { %v867_v11 = vadd.f32 %v3484_v58, %v866_v10  ;;  %v2806_v13 = vpop.f32.mrb[15].mxu1 }
 0xa73   :  { %878 = vrot.lane.b32.xlu1 %v867_v11, %s3228_s14  ;;  %v870_v19 = vadd.f32 %v867_v11, %v786_v17 }
 0xa75   :  { %v2542_v20 = vmul.f32 -1.442695, %v870_v19  ;;  %v1414_v19 = vld [vmem:[%s3851_s7 + $0x8] sm:$0xff] }
 0xa77   :  { %899 = vperm.xlu1 %3126, %v897_v14   ;;  %3145 = vpow2.f32 %v2542_v20 }
 0xa81   :  { %v3146_v21 = vpop.eup %3145 }
 0xa82   :  { %v874_v22 = vadd.f32 1.0, %v3146_v21 }
 0xa84   :  { %3147 = vrcp.f32 %v874_v22 }
 0xa8e   :  { %v3148_v23 = vpop.eup %3147 }
 0xa8f   :  { %v888_v29 = vsub.f32 1.0, %v3148_v23  ;;  %v894_v32 = vmul.f32 %v3148_v23, %v778_v7 }
 0xae5   :  { %v879_v24 = vpop.permute.xlu1 %878 }
 0xae6   :  { %v881_v25 = vmul.f32 %v3148_v23, %v879_v24 }
 0xae8   :  { %883 = vrot.lane.b32.xlu0 %v881_v25, %s3228_s14 }
 0xaf6   :  { %v3559_v31 = vpop.permute.xlu1 %899 }
 0xaf7   :  { %vm901_vm11 = vcmp.eq.s32.totalorder %v3559_v31, 1 }
 0xb5a   :  { %v884_v26 = vpop.permute.xlu0 %883 }
 0xb5b   :  { %v886_v27 = vadd.f32 %v884_v26, %v786_v17  ;;  %v1413_v17 = vld [vmem:[%s3851_s7] sm:$0xff] }
 0xb5c   :  { %v3054_v20 = vpack.c.bf16 %v1414_v19, %v1413_v17 }
 0xb5d   :  { %3149 = vtanh.f32 %v886_v27 }
 0xb5e   :  { %3055 = vmatprep.subr.bf16.mxu0 %v3054_v20 }
 0xb67   :  { %v3150_v28 = vpop.eup %3149 }
 0xb68   :  { %890 = vrot.lane.b32.xlu0 %v3150_v28, %s3229_s1 }
 0xbda   :  { %v891_v30 = vpop.permute.xlu0 %890 }
 0xbdb   :  { %v893_v33 = vmul.f32 %v891_v30, %v888_v29  ;;  %v1415_v29 = vld [vmem:[%s3851_s7 + $0x10] sm:$0xff]  ;;  %v1416_v30 = vld [vmem:[%s3851_s7 + $0x18] sm:$0xff] }
 0xbdd   :  { %v895_v34 = vadd.f32 %v894_v32, %v893_v33  ;;  %v3058_v32 = vpack.c.bf16 %v1416_v30, %v1415_v29 }
 0xbdf   :  { %v902_v35 = vsel %vm901_vm11, %v895_v34, %v778_v7  ;;  %v1405_v34 = vld [vmem:[#allocation3] sm:$0xff] }
 0xbe0   :  { %904 = vrot.lane.b32.xlu1 %v902_v35, %s3229_s1 }
 0xc52   :  { %v905_v36 = vpop.permute.xlu1 %904 }
 0xc53   :  { %908 = vst.msk [vmem:[#allocation3 + $0x18] sm:$0xff] %vm425_vm5, %v905_v36  ;;  %2816 = vmatmul.mubr.msk.f32.vlgmr.msra.gmra.mrb[16].mxu1 %vm425_vm5, %v905_v36  ;;  %v1407_v36 = vld [vmem:[#allocation3 + $0x10] sm:$0xff] }
 0xc54   :  { %3038 = vmatpush3.bf16.msra.mxu1 %v3436_v12  ;;  %2826 = vmatprep.mubr.msk.f32.mxu1 %vm3226_vm0, %v3227_v16 }
 0xc55   :  { %3039 = vmatprep.subr.bf16.mxu1 %v3225_v9 }
 0xc58   :  { %3041 = vmatpush3.bf16.msra.mxu1 %v3446_v15 }
 0xc59   :  { %3048 = vmatprep.subr.bf16.mxu1 %v3225_v9 }
 0xd26   :  { %v990_v37 = vpop.f32.mrb[16].mxu1 }
 0xd27   :  { %v991_v38 = vadd.f32 %v3484_v58, %v990_v37  ;;  %v2817_v39 = vpop.f32.mrb[17].mxu1  ;;  %v1408_v37 = vld [vmem:[#allocation3 + $0x18] sm:$0xff] }
 0xd29   :  { %1002 = vrot.lane.b32.xlu0 %v991_v38, %s3228_s14  ;;  %v994_v43 = vadd.f32 %v991_v38, %v910_v42 }
 0xd2b   :  { %v2545_v44 = vmul.f32 -1.442695, %v994_v43 }
 0xd2d   :  { %1023 = vperm.xlu0 %3125, %v1021_v40   ;;  %3151 = vpow2.f32 %v2545_v44  ;;  %v1269_v44 = vsel %vm1268_vm1, 1, %v3223_v0 }
 0xd37   :  { %v3152_v45 = vpop.eup %3151 }
 0xd38   :  { %v998_v46 = vadd.f32 1.0, %v3152_v45  ;;  %v3636_v45 = vld [vmem:[%s3852_s9] ss:$0 sm:$0xff] }
 0xd3a   :  { %3153 = vrcp.f32 %v998_v46 }
 0xd44   :  { %v3154_v47 = vpop.eup %3153 }
 0xd45   :  { %v1012_v53 = vsub.f32 1.0, %v3154_v47  ;;  %v1018_v56 = vmul.f32 %v3154_v47, %v902_v35 }
 0xd9b   :  { %v1003_v48 = vpop.permute.xlu0 %1002 }
 0xd9c   :  { %v1005_v49 = vmul.f32 %v3154_v47, %v1003_v48 }
 0xd9e   :  { %1007 = vrot.lane.b32.xlu1 %v1005_v49, %s3228_s14 }
 0xdac   :  { %v3579_v55 = vpop.permute.xlu0 %1023 }
 0xdad   :  { %vm1025_vm13 = vcmp.eq.s32.totalorder %v3579_v55, 1 }
 0xe10   :  { %v1008_v50 = vpop.permute.xlu1 %1007 }
 0xe11   :  { %v1010_v51 = vadd.f32 %v1008_v50, %v910_v42 }
 0xe13   :  { %3155 = vtanh.f32 %v1010_v51 }
 0xe1d   :  { %v3156_v52 = vpop.eup %3155 }
 0xe1e   :  { %1014 = vrot.lane.b32.xlu1 %v3156_v52, %s3229_s1 }
 0xe90   :  { %v1015_v54 = vpop.permute.xlu1 %1014 }
 0xe91   :  { %v1017_v57 = vmul.f32 %v1015_v54, %v1012_v53 }
 0xe93   :  { %v1019_v60 = vadd.f32 %v1018_v56, %v1017_v57 }
 0xe95   :  { %v1026_v61 = vsel %vm1025_vm13, %v1019_v60, %v902_v35  ;;  %v1406_v35 = vld [vmem:[#allocation3 + $0x8] sm:$0xff] }
 0xe96   :  { %1028 = vrot.lane.b32.xlu0 %v1026_v61, %s3229_s1 }
 0xf08   :  { %v1029_v62 = vpop.permute.xlu0 %1028 }
 0xf09   :  { %1032 = vst.msk [vmem:[#allocation3 + $0x20] sm:$0xff] %vm425_vm5, %v1029_v62  ;;  %2827 = vmatmul.mubr.msk.f32.vlgmr.msra.gmra.mrb[18].mxu1 %vm425_vm5, %v1029_v62 }
 0xf0a   :  { %3050 = vmatpush3.bf16.msra.mxu1 %v3436_v12  ;;  %2848 = vmatprep.mubr.msk.f32.mxu1 %vm3226_vm0, %v3227_v16  ;;  %v1034_v12 = vld [vmem:[#allocation2 + $0x28] sm:$0xff] }
 0xf0b   :  { %3051 = vmatprep.subr.bf16.mxu1 %v3225_v9 }
 0xf0e   :  { %3053 = vmatpush3.bf16.msra.mxu1 %v3446_v15 }
 0xf0f   :  { %3062 = vmatprep.subr.bf16.mxu1 %v3225_v9 }
 0xf10   :  { %v1409_v38 = vld [vmem:[#allocation3 + $0x20] sm:$0xff] }
 0xfdc   :  { %v1114_v63 = vpop.f32.mrb[18].mxu1 }
 0xfdd   :  { %v1115_v1 = vadd.f32 %v3484_v58, %v1114_v63  ;;  %v2828_v2 = vpop.f32.mrb[19].mxu1 }
 0xfdf   :  { %1126 = vrot.lane.b32.xlu1 %v1115_v1, %s3228_s14  ;;  %v1118_v5 = vadd.f32 %v1115_v1, %v1034_v12 }
 0xfe1   :  { %v2548_v6 = vmul.f32 -1.442695, %v1118_v5 }
 0xfe3   :  { %1147 = vperm.xlu1 %3126, %v1145_v4   ;;  %3157 = vpow2.f32 %v2548_v6 }
 0xfed   :  { %v3158_v7 = vpop.eup %3157 }
 0xfee   :  { %v1122_v8 = vadd.f32 1.0, %v3158_v7 }
 0xff0   :  { %3159 = vrcp.f32 %v1122_v8 }
 0xffa   :  { %v3160_v15 = vpop.eup %3159 }
 0xffb   :  { %v1136_v22 = vsub.f32 1.0, %v3160_v15  ;;  %v1142_v25 = vmul.f32 %v3160_v15, %v1026_v61 }
0x1051   :  { %v1127_v10 = vpop.permute.xlu1 %1126 }
0x1052   :  { %v1129_v11 = vmul.f32 %v3160_v15, %v1127_v10  ;;  %v1562_v15 = vld [vmem:[%s3853_s8] sm:$0xff]  ;;  %v1563_v10 = vld [vmem:[%s3853_s8 + $0x8] sm:$0xff] }
0x1054   :  { %1131 = vrot.lane.b32.xlu0 %v1129_v11, %s3228_s14  ;;  %v3658_v11 = vpack.c.bf16 %v1563_v10, %v1562_v15 }
0x1062   :  { %v3605_v24 = vpop.permute.xlu1 %1147 }
0x1063   :  { %vm1149_vm15 = vcmp.eq.s32.totalorder %v3605_v24, 1 }
0x10c6   :  { %v1132_v13 = vpop.permute.xlu0 %1131 }
0x10c7   :  { %v1134_v14 = vadd.f32 %v1132_v13, %v1034_v12  ;;  %v1564_v13 = vld [vmem:[%s3853_s8 + $0x10] sm:$0xff] }
0x10c9   :  { %3161 = vtanh.f32 %v1134_v14  ;;  %v1565_v14 = vld [vmem:[%s3853_s8 + $0x18] sm:$0xff] }
0x10ca   :  { %v3668_v17 = vpack.c.bf16 %v1565_v14, %v1564_v13 }
0x10d3   :  { %v3162_v21 = vpop.eup %3161 }
0x10d4   :  { %1138 = vrot.lane.b32.xlu0 %v3162_v21, %s3229_s1 }
0x1146   :  { %v1139_v23 = vpop.permute.xlu0 %1138 }
0x1147   :  { %v1141_v26 = vmul.f32 %v1139_v23, %v1136_v22 }
0x1149   :  { %v1143_v27 = vadd.f32 %v1142_v25, %v1141_v26 }
0x114b   :  { %v3610_v28 = vsel %vm1149_vm15, %v1143_v27, %v1026_v61  ;;  %v1158_v61 = vld [vmem:[#allocation2 + $0x30] sm:$0xff] }
0x114c   :  { %1152 = vrot.lane.b32.xlu1 %v3610_v28, %s3229_s1 }
0x11be   :  { %v1153_v33 = vpop.permute.xlu1 %1152 }
0x11bf   :  { %1156 = vst.msk [vmem:[#allocation3 + $0x28] sm:$0xff] %vm425_vm5, %v1153_v33  ;;  %2838 = vmatmul.mubr.msk.f32.vlgmr.msra.gmra.mrb[16].mxu0 %vm425_vm5, %v1153_v33 }
0x11c0   :  { %3057 = vmatpush3.bf16.msra.mxu0 %v3054_v20  ;;  %2859 = vmatprep.mubr.msk.f32.mxu0 %vm425_vm5, %v1405_v34 }
0x11c1   :  { %3059 = vmatprep.subr.bf16.mxu0 %v3058_v32 }
0x11c4   :  { %3061 = vmatpush3.bf16.msra.mxu0 %v3058_v32  ;;  %v3702_v32 = vld [vmem:[%s3854_s10] ss:$0 sm:$0xff] }
0x11c5   :  { %3074 = vmatprep.subr.bf16.mxu0 %v3225_v9 }
0x11c6   :  { %v1410_v39 = vld [vmem:[#allocation3 + $0x28] sm:$0xff] }
0x11c7   :  { %2860 = vmatmul.mubr.msk.f32.vlgmr.msra.gmra.mrb[18].mxu0 %vm425_vm5, %v1406_v35 }
0x11c8   :  { %2862 = vmatprep.mubr.msk.f32.mxu0 %vm425_vm5, %v1407_v36  ;;  %3076 = vmatpush3.bf16.msra.mxu0 %v3658_v11 }
0x11c9   :  { %3077 = vmatprep.subr.bf16.mxu0 %v3225_v9 }
0x11cb   :  { %2863 = vmatmul.mubr.msk.f32.gmra.mrb[20].mxu0 %vm425_vm5, %v1408_v37 }
0x11cc   :  { %2865 = vmatprep.mubr.msk.f32.mxu0 %vm425_vm5, %v1409_v38  ;;  %3079 = vmatpush3.bf16.msra.mxu0 %v3668_v17 }
0x11cd   :  { %3086 = vmatprep.subr.bf16.mxu0 %v3225_v9 }
0x11cf   :  { %2866 = vmatmul.mubr.msk.f32.gmra.mrb[22].mxu0 %vm425_vm5, %v1410_v39 }
0x1292   :  { %v1238_v40 = vpop.f32.mrb[16].mxu0 }
0x1293   :  { %v1239_v42 = vadd.f32 %v3484_v58, %v1238_v40  ;;  %v2839_v43 = vpop.f32.mrb[17].mxu0 }
0x1295   :  { %1250 = vrot.lane.b32.xlu0 %v1239_v42, %s3228_s14  ;;  %v1242_v62 = vadd.f32 %v1239_v42, %v1158_v61 }
0x1297   :  { %v2551_v63 = vmul.f32 -1.442695, %v1242_v62 }
0x1299   :  { %1271 = vperm.xlu0 %3125, %v1269_v44   ;;  %3163 = vpow2.f32 %v2551_v63 }
0x129a   :  { %v2861_v46 = vpop.f32.mrb[18].mxu0 }
0x129b   :  { %v1520_v47 = vadd.f32 %v2861_v46, %v3636_v45  ;;  %v1514_v48 = vpop.f32.mrb[19].mxu0 }
0x129c   :  { %v1515_v49 = vadd.f32 %v3636_v45, %v1514_v48 }
0x129d   :  { %1554 = vst.msk [vmem:[#allocation2 + $0x8] sm:$0xff] %vm404_vm2, %v1520_v47 }
0x129e   :  { %1553 = vst.msk [vmem:[#allocation2] sm:$0xff] %vm404_vm2, %v1515_v49  ;;  %v2864_v50 = vpop.f32.mrb[20].mxu0 }
0x129f   :  { %v1530_v51 = vadd.f32 %v2864_v50, %v3636_v45  ;;  %v1524_v52 = vpop.f32.mrb[21].mxu0  ;;  %v1282_v50 = vld [vmem:[#allocation2 + $0x38] sm:$0xff] }
0x12a0   :  { %v1525_v53 = vadd.f32 %v3636_v45, %v1524_v52 }
0x12a1   :  { %1556 = vst.msk [vmem:[#allocation2 + $0x18] sm:$0xff] %vm404_vm2, %v1530_v51 }
0x12a2   :  { %1555 = vst.msk [vmem:[#allocation2 + $0x10] sm:$0xff] %vm404_vm2, %v1525_v53  ;;  %v2867_v54 = vpop.f32.mrb[22].mxu0 }
0x12a3   :  { %v1540_v56 = vadd.f32 %v2867_v54, %v3636_v45  ;;  %v1534_v57 = vpop.f32.mrb[23].mxu0  ;;  %v3164_v1 = vpop.eup %3163 }
0x12a4   :  { %v1535_v60 = vadd.f32 %v3636_v45, %v1534_v57  ;;  %v1246_v2 = vadd.f32 1.0, %v3164_v1 }
0x12a5   :  { %1558 = vst.msk [vmem:[#allocation2 + $0x28] sm:$0xff] %vm404_vm2, %v1540_v56  ;;  %v1561_v36 = vld [vmem:[#allocation2] sm:$0xff] }
0x12a6   :  { %1557 = vst.msk [vmem:[#allocation2 + $0x20] sm:$0xff] %vm404_vm2, %v1535_v60  ;;  %3165 = vrcp.f32 %v1246_v2 }
0x12ac   :  { %v2082_v55 = vld [vmem:[#allocation2 + $0x28] sm:$0xff] }
0x12ad   :  { %v1979_v31 = vld [vmem:[#allocation2 + $0x20] sm:$0xff] }
0x12b0   :  { %v3166_v4 = vpop.eup %3165 }
0x12b1   :  { %v1260_v19 = vsub.f32 1.0, %v3166_v4  ;;  %v1266_v22 = vmul.f32 %v3166_v4, %v3610_v28 }
0x1307   :  { %v1251_v12 = vpop.permute.xlu0 %1250 }
0x1308   :  { %v1253_v5 = vmul.f32 %v3166_v4, %v1251_v12  ;;  %v1393_v4 = vsel %vm1392_vm6, 1, %v3223_v0  ;;  %v1670_v0 = vld [vmem:[#allocation2 + $0x8] sm:$0xff] }
0x130a   :  { %1255 = vrot.lane.b32.xlu1 %v1253_v5, %s3228_s14 }
0x1318   :  { %v3672_v21 = vpop.permute.xlu0 %1271 }
0x1319   :  { %vm1273_vm3 = vcmp.eq.s32.totalorder %v3672_v21, 1 }
0x137c   :  { %v1256_v6 = vpop.permute.xlu1 %1255 }
0x137d   :  { %v1258_v7 = vadd.f32 %v1256_v6, %v1158_v61 }
0x137f   :  { %3167 = vtanh.f32 %v1258_v7 }
0x1389   :  { %v3168_v8 = vpop.eup %3167 }
0x138a   :  { %1262 = vrot.lane.b32.xlu1 %v3168_v8, %s3229_s1 }
0x13fc   :  { %v1263_v20 = vpop.permute.xlu1 %1262 }
0x13fd   :  { %v1265_v23 = vmul.f32 %v1263_v20, %v1260_v19 }
0x13ff   :  { %v1267_v25 = vadd.f32 %v1266_v22, %v1265_v23 }
0x1401   :  { %v3679_v26 = vsel %vm1273_vm3, %v1267_v25, %v3610_v28 }
0x1402   :  { %1276 = vrot.lane.b32.xlu0 %v3679_v26, %s3229_s1 }
0x1474   :  { %v1277_v27 = vpop.permute.xlu0 %1276 }
0x1475   :  { %1280 = vst.msk [vmem:[#allocation3 + $0x30] sm:$0xff] %vm425_vm5, %v1277_v27  ;;  %2849 = vmatmul.mubr.msk.f32.vlgmr.msra.gmra.mrb[20].mxu1 %vm425_vm5, %v1277_v27 }
0x1476   :  { %3064 = vmatpush3.bf16.msra.mxu1 %v3658_v11  ;;  %2879 = vmatprep.mubr.msk.f32.mxu1 %vm3226_vm0, %v3227_v16 }
0x1477   :  { %3065 = vmatprep.subr.bf16.mxu1 %v3225_v9 }
0x147a   :  { %3067 = vmatpush3.bf16.msra.mxu1 %v3668_v17 }
0x147b   :  { %3068 = vmatprep.subr.bf16.mxu1 %v3225_v9 }
0x147c   :  { %v1411_v28 = vld [vmem:[#allocation3 + $0x30] sm:$0xff] }
0x147d   :  { %2880 = vmatmul.mubr.f32.vlgmr.msra.gmra.mrb[22].mxu1 %v3227_v16  ;;  %2868 = vmatprep.mubr.msk.f32.mxu0 %vm425_vm5, %v1411_v28 }
0x147e   :  { %3070 = vmatpush3.bf16.msra.mxu1 %v3658_v11  ;;  %2890 = vmatprep.mubr.msk.f32.mxu1 %vm3226_vm0, %v3227_v16 }
0x147f   :  { %3071 = vmatprep.subr.bf16.mxu1 %v3225_v9 }
0x1482   :  { %3073 = vmatpush3.bf16.msra.mxu1 %v3668_v17 }
0x1483   :  { %3080 = vmatprep.subr.bf16.mxu1 %v3225_v9 }
0x1548   :  { %v1362_v29 = vpop.f32.mrb[20].mxu1 }
0x1549   :  { %v2850_v30 = vpop.f32.mrb[21].mxu1  ;;  %v1363_v49 = vadd.f32 %v3484_v58, %v1362_v29 }
0x154b   :  { %v1366_v51 = vadd.f32 %v1363_v49, %v1282_v50 }
0x154d   :  { %v2554_v52 = vmul.f32 -1.442695, %v1366_v51 }
0x1550   :  { %v1639_v33 = vpop.f32.mrb[22].mxu1 }
0x1551   :  { %v1640_v34 = vadd.f32 %v3702_v32, %v1639_v33  ;;  %v2881_v35 = vpop.f32.mrb[23].mxu1 }
0x1553   :  { %1651 = vrot.lane.b32.xlu1 %v1640_v34, %s3228_s14  ;;  %v1643_v37 = vadd.f32 %v1640_v34, %v1561_v36 }
0x1555   :  { %v2565_v38 = vmul.f32 -1.442695, %v1643_v37 }
0x1557   :  { %3169 = vpow2.f32 %v2565_v38 }
0x1561   :  { %v3170_v39 = vpop.eup %3169 }
0x1562   :  { %v1647_v40 = vadd.f32 1.0, %v3170_v39 }
0x1564   :  { %3171 = vrcp.f32 %v1647_v40 }
0x156e   :  { %v3172_v42 = vpop.eup %3171 }
0x156f   :  { %v1661_v56 = vsub.f32 1.0, %v3172_v42  ;;  %v1667_v60 = vmul.f32 0.0, %v3172_v42 }
0x15c5   :  { %v1652_v43 = vpop.permute.xlu1 %1651 }
0x15c6   :  { %v1654_v44 = vmul.f32 %v3172_v42, %v1652_v43 }
0x15c8   :  { %1656 = vrot.lane.b32.xlu0 %v1654_v44, %s3228_s14 }
0x163a   :  { %v1657_v46 = vpop.permute.xlu0 %1656 }
0x163b   :  { %v1659_v47 = vadd.f32 %v1657_v46, %v1561_v36 }
0x163d   :  { %3173 = vtanh.f32 %v1659_v47 }
0x163e   :  { %3175 = vpow2.f32 %v2554_v52 }
0x1647   :  { %v3174_v48 = vpop.eup %3173 }
0x1648   :  { %1663 = vrot.lane.b32.xlu1 %v3174_v48, %s3229_s1  ;;  %v3176_v53 = vpop.eup %3175 }
0x1649   :  { %v1370_v54 = vadd.f32 1.0, %v3176_v53  ;;  %v1773_v53 = vld [vmem:[#allocation2 + $0x10] sm:$0xff] }
0x164b   :  { %3177 = vrcp.f32 %v1370_v54 }
0x164c   :  { %1374 = vrot.lane.b32.xlu1 %v1363_v49, %s3228_s14 }
0x1655   :  { %v3178_v63 = vpop.eup %3177 }
0x1656   :  { %v1384_v27 = vsub.f32 1.0, %v3178_v63  ;;  %v1390_v30 = vmul.f32 %v3178_v63, %v3679_v26 }
0x16ba   :  { %v1664_v57 = vpop.permute.xlu1 %1663 }
0x16bb   :  { %v1666_v61 = vmul.f32 %v1664_v57, %v1661_v56 }
0x16bd   :  { %v1668_v62 = vadd.f32 %v1667_v60, %v1666_v61 }
0x16be   :  { %v1375_v1 = vpop.permute.xlu1 %1374 }
0x16bf   :  { %v1377_v2 = vmul.f32 %v3178_v63, %v1375_v1  ;;  %v1669_v58 = vsel %vm530_vm4, %v1668_v62, 0.0 }
0x16c0   :  { %1672 = vrot.lane.b32.xlu0 %v1669_v58, %s3229_s1 }
0x16c1   :  { %1379 = vrot.lane.b32.xlu1 %v1377_v2, %s3228_s14 }
0x16c5   :  { %1395 = vperm.xlu1 %3126, %v1393_v4  }
0x1732   :  { %v1673_v12 = vpop.permute.xlu0 %1672 }
0x1733   :  { %2891 = vmatmul.mubr.msk.f32.vlgmr.msra.gmra.mrb[24].mxu1 %vm425_vm5, %v1673_v12  ;;  %v1380_v10 = vpop.permute.xlu1 %1379 }
0x1734   :  { %3082 = vmatpush3.bf16.msra.mxu1 %v3658_v11  ;;  %2912 = vmatprep.mubr.msk.f32.mxu1 %vm3226_vm0, %v3227_v16  ;;  %v1382_v13 = vadd.f32 %v1380_v10, %v1282_v50 }
0x1735   :  { %3083 = vmatprep.subr.bf16.mxu1 %v3225_v9 }
0x1738   :  { %3085 = vmatpush3.bf16.msra.mxu1 %v3668_v17 }
0x1739   :  { %3092 = vmatprep.subr.bf16.mxu1 %v3225_v9 }
0x1744   :  { %v3727_v29 = vpop.permute.xlu1 %1395 }
0x1745   :  { %vm1397_vm4 = vcmp.eq.s32.totalorder %v3727_v29, 1 }
0x1806   :  { %v1742_v59 = vpop.f32.mrb[24].mxu1 }
0x1807   :  { %v1743_v18 = vadd.f32 %v3702_v32, %v1742_v59  ;;  %v2892_v5 = vpop.f32.mrb[25].mxu1 }
0x1809   :  { %1754 = vrot.lane.b32.xlu0 %v1743_v18, %s3228_s14  ;;  %v1746_v6 = vadd.f32 %v1743_v18, %v1670_v0 }
0x180b   :  { %v2567_v7 = vmul.f32 -1.442695, %v1746_v6 }
0x180d   :  { %3179 = vpow2.f32 %v2567_v7 }
0x1817   :  { %v3180_v8 = vpop.eup %3179 }
0x1818   :  { %v1750_v15 = vadd.f32 1.0, %v3180_v8  ;;  %v1876_v8 = vld [vmem:[#allocation2 + $0x18] sm:$0xff] }
0x181a   :  { %3181 = vrcp.f32 %v1750_v15 }
0x181b   :  { %3183 = vtanh.f32 %v1382_v13 }
0x1824   :  { %v3182_v14 = vpop.eup %3181 }
0x1825   :  { %v3184_v22 = vpop.eup %3183  ;;  %v1764_v38 = vsub.f32 1.0, %v3182_v14  ;;  %v1770_v40 = vmul.f32 %v3182_v14, %v1669_v58 }
0x187b   :  { %v1755_v19 = vpop.permute.xlu0 %1754 }
0x187c   :  { %v1757_v20 = vmul.f32 %v3182_v14, %v1755_v19 }
0x187e   :  { %1759 = vrot.lane.b32.xlu0 %v1757_v20, %s3228_s14 }
0x1882   :  { %1386 = vrot.lane.b32.xlu0 %v3184_v22, %s3229_s1 }
0x18f0   :  { %v1760_v23 = vpop.permute.xlu0 %1759 }
0x18f1   :  { %v1762_v25 = vadd.f32 %v1760_v23, %v1670_v0 }
0x18f3   :  { %3185 = vtanh.f32 %v1762_v25 }
0x18f4   :  { %v1387_v28 = vpop.permute.xlu0 %1386 }
0x18f5   :  { %v1389_v33 = vmul.f32 %v1387_v28, %v1384_v27 }
0x18f7   :  { %v1391_v34 = vadd.f32 %v1390_v30, %v1389_v33 }
0x18f9   :  { %v1398_v35 = vsel %vm1397_vm4, %v1391_v34, %v3679_v26 }
0x18fa   :  { %1400 = vrot.lane.b32.xlu0 %v1398_v35, %s3229_s1 }
0x18fd   :  { %v3186_v36 = vpop.eup %3185 }
0x18fe   :  { %1766 = vrot.lane.b32.xlu1 %v3186_v36, %s3229_s1 }
0x196c   :  { %v3736_v37 = vpop.permute.xlu0 %1400 }
0x196d   :  { %1404 = vst.msk [vmem:[#allocation3 + $0x38] sm:$0xff] %vm425_vm5, %v3736_v37 }
0x1970   :  { %v1767_v39 = vpop.permute.xlu1 %1766 }
0x1971   :  { %v1769_v42 = vmul.f32 %v1767_v39, %v1764_v38 }
0x1973   :  { %v1771_v43 = vadd.f32 %v1770_v40, %v1769_v42 }
0x1974   :  { %v1412_v44 = vld [vmem:[#allocation3 + $0x38] sm:$0xff] }
0x1975   :  { %2869 = vmatmul.mubr.msk.f32.gmra.mrb[24].mxu0 %vm425_vm5, %v1412_v44  ;;  %v1772_v26 = vsel %vm653_vm7, %v1771_v43, %v1669_v58 }
0x1976   :  { %1775 = vrot.lane.b32.xlu1 %v1772_v26, %s3229_s1  ;;  %2901 = vmatprep.mubr.msk.f32.mxu0 %vm3226_vm0, %v3227_v16 }
0x19e8   :  { %v1776_v46 = vpop.permute.xlu1 %1775 }
0x19e9   :  { %2902 = vmatmul.mubr.msk.f32.vlgmr.msra.gmra.mrb[26].mxu0 %vm425_vm5, %v1776_v46 }
0x19ea   :  { %3088 = vmatpush3.bf16.msra.mxu0 %v3658_v11  ;;  %2923 = vmatprep.mubr.msk.f32.mxu0 %vm3226_vm0, %v3227_v16 }
0x19eb   :  { %3089 = vmatprep.subr.bf16.mxu0 %v3225_v9 }
0x19ee   :  { %3091 = vmatpush3.bf16.msra.mxu0 %v3668_v17 }
0x19ef   :  { %3098 = vmatprep.subr.bf16.mxu0 %v3225_v9 }
0x1a48   :  { %v2870_v41 = vpop.f32.mrb[24].mxu0 }
0x1a49   :  { %v1550_v47 = vadd.f32 %v2870_v41, %v3636_v45  ;;  %v1544_v48 = vpop.f32.mrb[25].mxu0 }
0x1a4a   :  { %v1545_v49 = vadd.f32 %v3636_v45, %v1544_v48 }
0x1a4b   :  { %1560 = vst.msk [vmem:[#allocation2 + $0x38] sm:$0xff] %vm404_vm2, %v1550_v47 }
0x1a4c   :  { %1559 = vst.msk [vmem:[#allocation2 + $0x30] sm:$0xff] %vm404_vm2, %v1545_v49 }
0x1abc   :  { %v1845_v50 = vpop.f32.mrb[26].mxu0 }
0x1abd   :  { %v1846_v51 = vadd.f32 %v3702_v32, %v1845_v50  ;;  %v2903_v52 = vpop.f32.mrb[27].mxu0 }
0x1abf   :  { %1857 = vrot.lane.b32.xlu0 %v1846_v51, %s3228_s14  ;;  %v1849_v54 = vadd.f32 %v1846_v51, %v1773_v53 }
0x1ac1   :  { %v2569_v56 = vmul.f32 -1.442695, %v1849_v54 }
0x1ac3   :  { %3187 = vpow2.f32 %v2569_v56 }
0x1acd   :  { %v3188_v57 = vpop.eup %3187 }
0x1ace   :  { %v1853_v60 = vadd.f32 1.0, %v3188_v57 }
0x1ad0   :  { %3189 = vrcp.f32 %v1853_v60 }
0x1ada   :  { %v3190_v61 = vpop.eup %3189 }
0x1adb   :  { %v1867_v58 = vsub.f32 1.0, %v3190_v61  ;;  %v1873_v12 = vmul.f32 %v3190_v61, %v1772_v26 }
0x1b31   :  { %v1858_v62 = vpop.permute.xlu0 %1857 }
0x1b32   :  { %v1860_v45 = vmul.f32 %v3190_v61, %v1858_v62 }
0x1b34   :  { %1862 = vrot.lane.b32.xlu1 %v1860_v45, %s3228_s14 }
0x1ba6   :  { %v1863_v63 = vpop.permute.xlu1 %1862 }
0x1ba7   :  { %v1865_v1 = vadd.f32 %v1863_v63, %v1773_v53 }
0x1ba9   :  { %3191 = vtanh.f32 %v1865_v1 }
0x1bb3   :  { %v3192_v2 = vpop.eup %3191 }
0x1bb4   :  { %1869 = vrot.lane.b32.xlu0 %v3192_v2, %s3229_s1 }
0x1c26   :  { %v1870_v4 = vpop.permute.xlu0 %1869 }
0x1c27   :  { %v1872_v59 = vmul.f32 %v1870_v4, %v1867_v58 }
0x1c29   :  { %v1874_v18 = vadd.f32 %v1873_v12, %v1872_v59 }
0x1c2b   :  { %v1875_v5 = vsel %vm777_vm9, %v1874_v18, %v1772_v26 }
0x1c2c   :  { %1878 = vrot.lane.b32.xlu1 %v1875_v5, %s3229_s1 }
0x1c9e   :  { %v1879_v0 = vpop.permute.xlu1 %1878 }
0x1c9f   :  { %2913 = vmatmul.mubr.msk.f32.vlgmr.msra.gmra.mrb[26].mxu1 %vm425_vm5, %v1879_v0 }
0x1ca0   :  { %3094 = vmatpush3.bf16.msra.mxu1 %v3658_v11  ;;  %2934 = vmatprep.mubr.msk.f32.mxu1 %vm3226_vm0, %v3227_v16 }
0x1ca1   :  { %3095 = vmatprep.subr.bf16.mxu1 %v3225_v9 }
0x1ca4   :  { %3097 = vmatpush3.bf16.msra.mxu1 %v3668_v17 }
0x1ca5   :  { %3104 = vmatprep.subr.bf16.mxu1 %v3225_v9 }
0x1d72   :  { %v1948_v6 = vpop.f32.mrb[26].mxu1 }
0x1d73   :  { %v1949_v3 = vadd.f32 %v3702_v32, %v1948_v6  ;;  %v2914_v7 = vpop.f32.mrb[27].mxu1 }
0x1d75   :  { %1960 = vrot.lane.b32.xlu0 %v1949_v3, %s3228_s14  ;;  %v1952_v15 = vadd.f32 %v1949_v3, %v1876_v8 }
0x1d77   :  { %v2571_v10 = vmul.f32 -1.442695, %v1952_v15 }
0x1d79   :  { %3193 = vpow2.f32 %v2571_v10 }
0x1d83   :  { %v3194_v13 = vpop.eup %3193 }
0x1d84   :  { %v1956_v14 = vadd.f32 1.0, %v3194_v13 }
0x1d86   :  { %3195 = vrcp.f32 %v1956_v14  ;;  %v2185_v14 = vld [vmem:[#allocation2 + $0x30] sm:$0xff] }
0x1d90   :  { %v3196_v19 = vpop.eup %3195 }
0x1d91   :  { %v1970_v28 = vsub.f32 1.0, %v3196_v19  ;;  %v1976_v33 = vmul.f32 %v3196_v19, %v1875_v5 }
0x1de7   :  { %v1961_v20 = vpop.permute.xlu0 %1960 }
0x1de8   :  { %v1963_v22 = vmul.f32 %v3196_v19, %v1961_v20 }
0x1dea   :  { %1965 = vrot.lane.b32.xlu1 %v1963_v22, %s3228_s14 }
0x1e5c   :  { %v1966_v23 = vpop.permute.xlu1 %1965 }
0x1e5d   :  { %v1968_v25 = vadd.f32 %v1966_v23, %v1876_v8 }
0x1e5f   :  { %3197 = vtanh.f32 %v1968_v25 }
0x1e69   :  { %v3198_v27 = vpop.eup %3197 }
0x1e6a   :  { %1972 = vrot.lane.b32.xlu0 %v3198_v27, %s3229_s1 }
0x1edc   :  { %v1973_v30 = vpop.permute.xlu0 %1972 }
0x1edd   :  { %v1975_v34 = vmul.f32 %v1973_v30, %v1970_v28 }
0x1edf   :  { %v1977_v35 = vadd.f32 %v1976_v33, %v1975_v34 }
0x1ee1   :  { %v1978_v36 = vsel %vm901_vm11, %v1977_v35, %v1875_v5 }
0x1ee2   :  { %1981 = vrot.lane.b32.xlu1 %v1978_v36, %s3229_s1 }
0x1f54   :  { %v1982_v38 = vpop.permute.xlu1 %1981 }
0x1f55   :  { %2924 = vmatmul.mubr.msk.f32.vlgmr.msra.gmra.mrb[28].mxu0 %vm425_vm5, %v1982_v38 }
0x1f56   :  { %3100 = vmatpush3.bf16.msra.mxu0 %v3658_v11  ;;  %2945 = vmatprep.mubr.msk.f32.mxu0 %vm3226_vm0, %v3227_v16 }
0x1f57   :  { %3101 = vmatprep.subr.bf16.mxu0 %v3225_v9 }
0x1f5a   :  { %3103 = vmatpush3.bf16.msra.mxu0 %v3668_v17 }
0x2028   :  { %v2051_v39 = vpop.f32.mrb[28].mxu0 }
0x2029   :  { %v2052_v40 = vadd.f32 %v3702_v32, %v2051_v39  ;;  %v2925_v42 = vpop.f32.mrb[29].mxu0 }
0x202b   :  { %2063 = vrot.lane.b32.xlu0 %v2052_v40, %s3228_s14  ;;  %v2055_v43 = vadd.f32 %v2052_v40, %v1979_v31 }
0x202d   :  { %v2573_v44 = vmul.f32 -1.442695, %v2055_v43 }
0x202f   :  { %3199 = vpow2.f32 %v2573_v44  ;;  %v2288_v44 = vld [vmem:[#allocation2 + $0x38] sm:$0xff] }
0x2039   :  { %v3200_v26 = vpop.eup %3199 }
0x203a   :  { %v2059_v46 = vadd.f32 1.0, %v3200_v26 }
0x203c   :  { %3201 = vrcp.f32 %v2059_v46 }
0x2046   :  { %v3202_v41 = vpop.eup %3201 }
0x2047   :  { %v2073_v52 = vsub.f32 1.0, %v3202_v41  ;;  %v2079_v54 = vmul.f32 %v3202_v41, %v1978_v36 }
0x209d   :  { %v2064_v47 = vpop.permute.xlu0 %2063 }
0x209e   :  { %v2066_v48 = vmul.f32 %v3202_v41, %v2064_v47 }
0x20a0   :  { %2068 = vrot.lane.b32.xlu1 %v2066_v48, %s3228_s14 }
0x2112   :  { %v2069_v49 = vpop.permute.xlu1 %2068 }
0x2113   :  { %v2071_v50 = vadd.f32 %v2069_v49, %v1979_v31 }
0x2115   :  { %3203 = vtanh.f32 %v2071_v50 }
0x211f   :  { %v3204_v51 = vpop.eup %3203 }
0x2120   :  { %2075 = vrot.lane.b32.xlu0 %v3204_v51, %s3229_s1 }
0x2192   :  { %v2076_v53 = vpop.permute.xlu0 %2075 }
0x2193   :  { %v2078_v56 = vmul.f32 %v2076_v53, %v2073_v52  ;;  %v2392_v52 = vld [vmem:[%s3855_s11 + $0x8] sm:$0xff]  ;;  %v2393_v53 = vld [vmem:[%s3855_s11 + $0x10] sm:$0xff] }
0x2195   :  { %v2080_v57 = vadd.f32 %v2079_v54, %v2078_v56  ;;  %v2394_v56 = vld [vmem:[%s3855_s11 + $0x18] sm:$0xff] }
0x2197   :  { %v2081_v60 = vsel %vm1025_vm13, %v2080_v57, %v1978_v36  ;;  %v3114_v57 = vpack.c.bf16 %v2394_v56, %v2393_v53 }
0x2198   :  { %2084 = vrot.lane.b32.xlu1 %v2081_v60, %s3229_s1 }
0x220a   :  { %v2085_v61 = vpop.permute.xlu1 %2084 }
0x220b   :  { %2935 = vmatmul.mubr.msk.f32.vlgmr.msra.gmra.mrb[28].mxu1 %vm425_vm5, %v2085_v61 }
0x220c   :  { %3106 = vmatpush3.bf16.msra.mxu1 %v3658_v11  ;;  %2956 = vmatprep.mubr.msk.f32.mxu1 %vm3226_vm0, %v3227_v16  ;;  %vm2484_vm0 = vcmask 31744  }
0x220d   :  { %3107 = vmatprep.subr.bf16.mxu1 %v3225_v9 }
0x2210   :  { %3109 = vmatpush3.bf16.msra.mxu1 %v3668_v17 }
0x22de   :  { %v2154_v62 = vpop.f32.mrb[28].mxu1 }
0x22df   :  { %v2155_v45 = vadd.f32 %v3702_v32, %v2154_v62  ;;  %v2936_v63 = vpop.f32.mrb[29].mxu1 }
0x22e1   :  { %2166 = vrot.lane.b32.xlu0 %v2155_v45, %s3228_s14  ;;  %v2158_v1 = vadd.f32 %v2155_v45, %v2082_v55 }
0x22e3   :  { %v2575_v2 = vmul.f32 -1.442695, %v2158_v1 }
0x22e5   :  { %3205 = vpow2.f32 %v2575_v2 }
0x22ef   :  { %v3206_v58 = vpop.eup %3205 }
0x22f0   :  { %v2162_v4 = vadd.f32 1.0, %v3206_v58  ;;  %v2580_v58 = vld [vmem:[%s3856_s12] ss:$0 sm:$0xff] }
0x22f2   :  { %3207 = vrcp.f32 %v2162_v4 }
0x22fc   :  { %v3208_v11 = vpop.eup %3207 }
0x22fd   :  { %v2176_v18 = vsub.f32 1.0, %v3208_v11  ;;  %v2182_v0 = vmul.f32 %v3208_v11, %v2081_v60 }
0x2353   :  { %v2167_v12 = vpop.permute.xlu0 %2166 }
0x2354   :  { %v2169_v16 = vmul.f32 %v3208_v11, %v2167_v12 }
0x2356   :  { %2171 = vrot.lane.b32.xlu1 %v2169_v16, %s3228_s14 }
0x23c8   :  { %v2172_v9 = vpop.permute.xlu1 %2171 }
0x23c9   :  { %v2174_v17 = vadd.f32 %v2172_v9, %v2082_v55 }
0x23cb   :  { %3209 = vtanh.f32 %v2174_v17 }
0x23d5   :  { %v3210_v59 = vpop.eup %3209 }
0x23d6   :  { %2178 = vrot.lane.b32.xlu0 %v3210_v59, %s3229_s1 }
0x2448   :  { %v2179_v5 = vpop.permute.xlu0 %2178 }
0x2449   :  { %v2181_v6 = vmul.f32 %v2179_v5, %v2176_v18 }
0x244b   :  { %v2183_v3 = vadd.f32 %v2182_v0, %v2181_v6 }
0x244d   :  { %v2184_v7 = vsel %vm1149_vm15, %v2183_v3, %v2081_v60 }
0x244e   :  { %2187 = vrot.lane.b32.xlu1 %v2184_v7, %s3229_s1 }
0x24c0   :  { %v2188_v8 = vpop.permute.xlu1 %2187 }
0x24c1   :  { %2946 = vmatmul.mubr.msk.f32.vlgmr.msra.gmra.mrb[30].mxu0 %vm425_vm5, %v2188_v8 }
0x24c2   :  { %2967 = vmatprep.mubr.msk.f32.mxu0 %vm425_vm5, %v3736_v37 }
0x2594   :  { %v2257_v15 = vpop.f32.mrb[30].mxu0 }
0x2595   :  { %v2258_v10 = vadd.f32 %v3702_v32, %v2257_v15  ;;  %v2947_v13 = vpop.f32.mrb[31].mxu0 }
0x2597   :  { %2269 = vrot.lane.b32.xlu0 %v2258_v10, %s3228_s14  ;;  %v2261_v19 = vadd.f32 %v2258_v10, %v2185_v14 }
0x2599   :  { %v2577_v20 = vmul.f32 -1.442695, %v2261_v19 }
0x259b   :  { %3211 = vpow2.f32 %v2577_v20 }
0x25a5   :  { %v3212_v24 = vpop.eup %3211 }
0x25a6   :  { %v2265_v22 = vadd.f32 1.0, %v3212_v24 }
0x25a8   :  { %3213 = vrcp.f32 %v2265_v22 }
0x25b2   :  { %v3214_v23 = vpop.eup %3213 }
0x25b3   :  { %v2279_v33 = vsub.f32 1.0, %v3214_v23  ;;  %v2285_v35 = vmul.f32 %v3214_v23, %v2184_v7 }
0x2609   :  { %v2270_v25 = vpop.permute.xlu0 %2269 }
0x260a   :  { %v2272_v27 = vmul.f32 %v3214_v23, %v2270_v25 }
0x260c   :  { %2274 = vrot.lane.b32.xlu1 %v2272_v27, %s3228_s14 }
0x267e   :  { %v2275_v28 = vpop.permute.xlu1 %2274 }
0x267f   :  { %v2277_v37 = vadd.f32 %v2275_v28, %v2185_v14 }
0x2681   :  { %3215 = vtanh.f32 %v2277_v37 }
0x268b   :  { %v3216_v30 = vpop.eup %3215 }
0x268c   :  { %2281 = vrot.lane.b32.xlu0 %v3216_v30, %s3229_s1 }
0x26fe   :  { %v2282_v34 = vpop.permute.xlu0 %2281 }
0x26ff   :  { %v2284_v36 = vmul.f32 %v2282_v34, %v2279_v33 }
0x2701   :  { %v2286_v38 = vadd.f32 %v2285_v35, %v2284_v36 }
0x2703   :  { %v2287_v39 = vsel %vm1273_vm3, %v2286_v38, %v2184_v7 }
0x2704   :  { %2290 = vrot.lane.b32.xlu1 %v2287_v39, %s3229_s1 }
0x2776   :  { %v2291_v40 = vpop.permute.xlu1 %2290 }
0x2777   :  { %2957 = vmatmul.mubr.msk.f32.vlgmr.msra.gmra.mrb[30].mxu1 %vm425_vm5, %v2291_v40 }
0x284a   :  { %v2360_v42 = vpop.f32.mrb[30].mxu1 }
0x284b   :  { %v2361_v31 = vadd.f32 %v3702_v32, %v2360_v42  ;;  %v2958_v43 = vpop.f32.mrb[31].mxu1  ;;  %v2391_v32 = vld [vmem:[%s3855_s11] sm:$0xff] }
0x284c   :  { %v3110_v54 = vpack.c.bf16 %v2392_v52, %v2391_v32 }
0x284d   :  { %2372 = vrot.lane.b32.xlu0 %v2361_v31, %s3228_s14  ;;  %v2364_v26 = vadd.f32 %v2361_v31, %v2288_v44 }
0x284e   :  { %3111 = vmatprep.subr.bf16.mxu0 %v3110_v54 }
0x284f   :  { %v2579_v46 = vmul.f32 -1.442695, %v2364_v26  ;;  %3113 = vmatpush3.bf16.msra.mxu0 %v3110_v54 }
0x2850   :  { %3115 = vmatprep.subr.bf16.mxu0 %v3114_v57 }
0x2851   :  { %3217 = vpow2.f32 %v2579_v46 }
0x2853   :  { %3117 = vmatpush3.bf16.msra.mxu0 %v3114_v57 }
0x285b   :  { %v3218_v41 = vpop.eup %3217 }
0x285c   :  { %v2368_v47 = vadd.f32 1.0, %v3218_v41 }
0x285e   :  { %3219 = vrcp.f32 %v2368_v47 }
0x2868   :  { %v3220_v21 = vpop.eup %3219 }
0x2869   :  { %v2382_v61 = vsub.f32 1.0, %v3220_v21  ;;  %v2388_v45 = vmul.f32 %v3220_v21, %v2287_v39 }
0x28bf   :  { %v2373_v48 = vpop.permute.xlu0 %2372 }
0x28c0   :  { %v2375_v49 = vmul.f32 %v3220_v21, %v2373_v48 }
0x28c2   :  { %2377 = vrot.lane.b32.xlu1 %v2375_v49, %s3228_s14 }
0x2934   :  { %v2378_v50 = vpop.permute.xlu1 %2377 }
0x2935   :  { %v2380_v51 = vadd.f32 %v2378_v50, %v2288_v44 }
0x2937   :  { %3221 = vtanh.f32 %v2380_v51 }
0x2941   :  { %v3222_v60 = vpop.eup %3221 }
0x2942   :  { %2384 = vrot.lane.b32.xlu0 %v3222_v60, %s3229_s1 }
0x29b4   :  { %v2385_v62 = vpop.permute.xlu0 %2384 }
0x29b5   :  { %v2387_v63 = vmul.f32 %v2385_v62, %v2382_v61 }
0x29b7   :  { %v2389_v55 = vadd.f32 %v2388_v45, %v2387_v63 }
0x29b9   :  { %v2390_v1 = vsel %vm1397_vm4, %v2389_v55, %v2287_v39 }
0x29ba   :  { %2403 = vrot.lane.b32.xlu1 %v2390_v1, %s3229_s1 }
0x2a2c   :  { %v2404_v2 = vpop.permute.xlu1 %2403 }
0x2a2d   :  { %2968 = vmatmul.mubr.msk.f32.vlgmr.msra.gmra.mrb[32].mxu0 %vm425_vm5, %v2404_v2 }
0x2b00   :  { %v2969_v4 = vpop.f32.mrb[32].mxu0 }
0x2b01   :  { %v2481_v11 = vadd.f32 %v2969_v4, %v2580_v58  ;;  %v2475_v12 = vpop.f32.mrb[33].mxu0 }
0x2b02   :  { %v2476_v16 = vadd.f32 %v2580_v58, %v2475_v12 }
0x2b03   :  { %2486 = vst.msk [vmem:[%s3857_s13 + $0x8] sm:$0xff] %vm2484_vm0, %v2481_v11 }
0x2b04   :  { %2485 = vst.msk [vmem:[%s3857_s13] sm:$0xff] %vm2484_vm0, %v2476_v16 }

</bundles_post_ra>
